<compile_context>
chip_gen: v7x
topology: tpu7x:2x2x1
jax: 0.10.0
libtpu: 0.0.40
codegen_flags: <defaults>
</compile_context>

<pallas_src>
import functools

import jax
import jax.numpy as jnp
from jax import lax
from jax.experimental import pallas as pl
from jax.experimental.pallas import tpu as pltpu
import numpy as np


# ----------------------------- Pallas kernel -------------------------------

def similarity_kernel(T1, T2, B1, B2, emb_ref, wih_ref, whh_ref, bg_ref,
                      wlin_ref, blin_ref, out_ref, gx_ref):
    """Fused two-sentence LSTM + last-hidden concat + linear + sigmoid.

    emb_ref : [T_max * 2B, E] time-major; rows t*2B .. t*2B+B-1 hold sentence-1's
              batch at step t, rows t*2B+B .. t*2B+2B-1 hold sentence-2's batch
              (zero padded in time / batch where needed).
    gx_ref  : VMEM scratch [T_max * 2B, 4H] holding the hoisted input projections.
    """
    B = max(B1, B2)
    TWO_B = 2 * B
    H = whh_ref.shape[0]
    T_max = emb_ref.shape[0] // TWO_B

    wih = wih_ref[...]            # [E, 4H]
    whh = whh_ref[...]            # [H, 4H]
    bg = bg_ref[...]              # [1, 4H]  (b_ih + b_hh)

    # (1) Hoist the input projection out of the recurrence: one MXU-friendly
    #     [T_max*2B, E] x [E, 4H] matmul for every timestep of both sentences.
    gx_ref[...] = jnp.dot(emb_ref[...], wih,
                          preferred_element_type=jnp.float32) + bg

    # Per-row sequence length (first B rows = sentence 1, last B = sentence 2).
    row_is_s1 = lax.broadcasted_iota(jnp.int32, (TWO_B, 1), 0) < B
    row_len = jnp.where(row_is_s1, T1, T2)                       # [2B, 1] int32

    def step(t, carry):
        h, c = carry                                             # [2B, H] each
        start = pl.multiple_of(t * TWO_B, TWO_B)
        gates = gx_ref[pl.ds(start, TWO_B), :] + jnp.dot(
            h, whh, preferred_element_type=jnp.float32)          # [2B, 4H]
        i = jax.nn.sigmoid(gates[:, 0 * H:1 * H])
        f = jax.nn.sigmoid(gates[:, 1 * H:2 * H])
        g = jnp.tanh(gates[:, 2 * H:3 * H])
        o = jax.nn.sigmoid(gates[:, 3 * H:4 * H])
        c_new = f * c + i * g
        h_new = o * jnp.tanh(c_new)
        if T1 == T2:                     # static: no masking needed
            return h_new, c_new
        valid = t < row_len              # freeze the shorter sequence's state
        return (jnp.where(valid, h_new, h), jnp.where(valid, c_new, c))

    h0 = jnp.zeros((TWO_B, H), jnp.float32)
    c0 = jnp.zeros((TWO_B, H), jnp.float32)
    # (2)(3) One fused recurrence for both sentences, fully unrolled (T static).
    h_last, _ = lax.fori_loop(0, T_max, step, (h0, c0), unroll=True)

    h1 = h_last[0:B, :]
    h2 = h_last[B:TWO_B, :]
    # Reproduce torch's zero-padding of the *hidden* rows when batch sizes differ.
    if B1 < B:
        h1 = jnp.where(lax.broadcasted_iota(jnp.int32, (B, 1), 0) < B1, h1, 0.0)
    elif B2 < B:
        h2 = jnp.where(lax.broadcasted_iota(jnp.int32, (B, 1), 0) < B2, h2, 0.0)

    # (4) Linear(2H -> 1): VPU multiply + lane reduce instead of concat + MXU.
    prod = h1 * wlin_ref[0:1, :] + h2 * wlin_ref[1:2, :]          # [B, H]
    logit = jnp.sum(prod, axis=1, keepdims=True) + blin_ref[...]  # [B, 1]
    out_ref[...] = jax.nn.sigmoid(logit)


# ------------------------------- Wrapper ------------------------------------

def sentence_similarity_forward(sent1, sent2, params):
    """sent1: [B1, T1] int32 token ids, sent2: [B2, T2] int32 token ids."""
    emb_table = params["embedding"]                        # [V, E]

    # Gather directly into time-major layout: [T, B, E] (no extra transpose pass).
    e1 = emb_table[sent1.T].astype(jnp.float32)            # [T1, B1, E]
    e2 = emb_table[sent2.T].astype(jnp.float32)            # [T2, B2, E]

    T1, B1 = e1.shape[0], e1.shape[1]
    T2, B2 = e2.shape[0], e2.shape[1]
    B = max(B1, B2)
    T_max = max(T1, T2)

    # Pad batch (forward()'s mismatched-batch branch) and time (for the fused loop).
    e1 = jnp.pad(e1, ((0, T_max - T1), (0, B - B1), (0, 0)))
    e2 = jnp.pad(e2, ((0, T_max - T2), (0, B - B2), (0, 0)))

    # Stack the two sentences along batch and flatten to 2D for one big matmul.
    emb2d = jnp.concatenate([e1, e2], axis=1).reshape(T_max * 2 * B, -1)

    H = params["w_hh_t"].shape[0]
    w_lin2 = params["w_lin"].reshape(2, H)      # row 0: h1 weights, row 1: h2 weights

    kernel = functools.partial(similarity_kernel, T1, T2, B1, B2)
    vmem = pl.BlockSpec(memory_space=pltpu.MemorySpace.VMEM)
    return pl.pallas_call(
        kernel,
        out_shape=jax.ShapeDtypeStruct((B, 1), jnp.float32),
        in_specs=[vmem] * 6,
        out_specs=vmem,
        scratch_shapes=[pltpu.VMEM((T_max * 2 * B, 4 * H), jnp.float32)],
        compiler_params=pltpu.CompilerParams(vmem_limit_bytes=32 * 1024 * 1024),
    )(emb2d, params["w_ih_t"], params["w_hh_t"], params["b_gates"],
      w_lin2, params["b_lin"])


# --------------------------- Pure-JAX reference ------------------------------

def _lstm_ref(emb, wih_t, whh_t, b, H):
    B = emb.shape[0]

    def step(carry, x_t):
        h, c = carry
        gates = x_t @ wih_t + h @ whh_t + b[0]
        i = jax.nn.sigmoid(gates[:, 0 * H:1 * H])
        f = jax.nn.sigmoid(gates[:, 1 * H:2 * H])
        g = jnp.tanh(gates[:, 2 * H:3 * H])
        o = jax.nn.sigmoid(gates[:, 3 * H:4 * H])
        c = f * c + i * g
        h = o * jnp.tanh(c)
        return (h, c), None

    (h, _), _ = lax.scan(step,
                         (jnp.zeros((B, H), jnp.float32),
                          jnp.zeros((B, H), jnp.float32)),
                         jnp.transpose(emb, (1, 0, 2)))
    return h


def sentence_similarity_ref(sent1, sent2, params, H):
    e1 = params["embedding"][sent1].astype(jnp.float32)
    e2 = params["embedding"][sent2].astype(jnp.float32)
    h1 = _lstm_ref(e1, params["w_ih_t"], params["w_hh_t"], params["b_gates"], H)
    h2 = _lstm_ref(e2, params["w_ih_t"], params["w_hh_t"], params["b_gates"], H)
    cat = jnp.concatenate([h1, h2], axis=1)
    return jax.nn.sigmoid(cat @ params["w_lin"] + params["b_lin"])


# ---------------------------------- Main -------------------------------------

if __name__ == "__main__":
    # Small shapes; embedding_dim == 2 * hidden_dim so nn.Linear(embedding_dim, 1)
    # matches the concatenated feature size (see notes above).
    V, E, H = 50, 64, 32
    B, T1, T2 = 8, 8, 12

    key = jax.random.PRNGKey(0)
    k_emb, k_wih, k_whh, k_bih, k_bhh, k_wl, k_bl, k_s1, k_s2 = jax.random.split(key, 9)

    params = {
        "embedding": jax.random.normal(k_emb, (V, E), jnp.float32) * 0.1,
        # PyTorch stores weight_ih [4H, E] / weight_hh [4H, H]; we keep transposed.
        "w_ih_t": jax.random.normal(k_wih, (E, 4 * H), jnp.float32) * 0.1,
        "w_hh_t": jax.random.normal(k_whh, (H, 4 * H), jnp.float32) * 0.1,
        "b_gates": (jax.random.normal(k_bih, (1, 4 * H), jnp.float32) * 0.1
                    + jax.random.normal(k_bhh, (1, 4 * H), jnp.float32) * 0.1),
        # nn.Linear(embedding_dim, 1): weight [1, 2H] stored transposed [2H, 1].
        "w_lin": jax.random.normal(k_wl, (2 * H, 1), jnp.float32) * 0.1,
        "b_lin": jax.random.normal(k_bl, (1, 1), jnp.float32) * 0.1,
    }

    sent1 = jax.random.randint(k_s1, (B, T1), 0, V, dtype=jnp.int32)
    sent2 = jax.random.randint(k_s2, (B, T2), 0, V, dtype=jnp.int32)

    out = jax.block_until_ready(sentence_similarity_forward(sent1, sent2, params))
    ref = jax.block_until_ready(sentence_similarity_ref(sent1, sent2, params, H))

    assert out.shape == (B, 1)
    np.testing.assert_allclose(np.asarray(out), np.asarray(ref), rtol=1e-5, atol=1e-5)
    print("KERNEL_OK")
</pallas_src>

<mosaic_0001>
module attributes {stable_mosaic.version = 11 : i64} {
  func.func @similarity_kernel(%arg0: memref<192x64xf32, #tpu.memory_space<vmem>>, %arg1: memref<64x128xf32, #tpu.memory_space<vmem>>, %arg2: memref<32x128xf32, #tpu.memory_space<vmem>>, %arg3: memref<1x128xf32, #tpu.memory_space<vmem>>, %arg4: memref<2x32xf32, #tpu.memory_space<vmem>>, %arg5: memref<1x1xf32, #tpu.memory_space<vmem>>, %arg6: memref<8x1xf32, #tpu.memory_space<vmem>>, %arg7: memref<192x128xf32, #tpu.memory_space<vmem>>) attributes {dimension_semantics = [], scalar_prefetch = 0 : i64, scratch_operands = 1 : i64, tpu.core_type = #tpu.core_type<tc>} {
    %c0 = arith.constant 0 : index
    %c0_0 = arith.constant 0 : index
    %0 = vector.load %arg1[%c0, %c0_0] : memref<64x128xf32, #tpu.memory_space<vmem>>, vector<64x128xf32>
    %c0_1 = arith.constant 0 : index
    %c0_2 = arith.constant 0 : index
    %1 = vector.load %arg2[%c0_1, %c0_2] : memref<32x128xf32, #tpu.memory_space<vmem>>, vector<32x128xf32>
    %c0_3 = arith.constant 0 : index
    %c0_4 = arith.constant 0 : index
    %2 = vector.load %arg3[%c0_3, %c0_4] : memref<1x128xf32, #tpu.memory_space<vmem>>, vector<1x128xf32>
    %c0_5 = arith.constant 0 : index
    %c0_6 = arith.constant 0 : index
    %3 = vector.load %arg0[%c0_5, %c0_6] : memref<192x64xf32, #tpu.memory_space<vmem>>, vector<192x64xf32>
    %cst = arith.constant dense<0.000000e+00> : vector<192x128xf32>
    %4 = tpu.matmul %3, %0, %cst {dimension_numbers = #tpu.dot_dimension_numbers<[1], [0], [0], [1], [0, 0, 1, 1], [], []>} : vector<192x64xf32>, vector<64x128xf32>, vector<192x128xf32> -> vector<192x128xf32>
    %5 = vector.broadcast %2 : vector<1x128xf32> to vector<192x128xf32>
    %6 = arith.addf %4, %5 : vector<192x128xf32>
    %c0_7 = arith.constant 0 : index
    %c0_8 = arith.constant 0 : index
    %7 = vector.load %arg7[%c0_7, %c0_8] : memref<192x128xf32, #tpu.memory_space<vmem>>, vector<192x128xf32>
    tpu.vector_store %arg7[%c0_7, %c0_8], %6 {strides = array<i32>} : memref<192x128xf32, #tpu.memory_space<vmem>>, vector<192x128xf32>,
    %8 = tpu.iota {dimensions = array<i32: 0>} : vector<16x1xi32>
    %c8_i32 = arith.constant 8 : i32
    %9 = vector.broadcast %c8_i32 : i32 to vector<16x1xi32>
    %10 = arith.cmpi slt, %8, %9 : vector<16x1xi32>
    %c8_i32_9 = arith.constant 8 : i32
    %c12_i32 = arith.constant 12 : i32
    %11 = vector.broadcast %c8_i32_9 : i32 to vector<16x1xi32>
    %12 = vector.broadcast %c12_i32 : i32 to vector<16x1xi32>
    %13 = arith.select %10, %11, %12 : vector<16x1xi1>, vector<16x1xi32>
    %cst_10 = arith.constant 0.000000e+00 : f32
    %14 = vector.broadcast %cst_10 : f32 to vector<16x32xf32>
    %cst_11 = arith.constant 0.000000e+00 : f32
    %15 = vector.broadcast %cst_11 : f32 to vector<16x32xf32>
    %c0_i32 = arith.constant 0 : i32
    %c16_i32 = arith.constant 16 : i32
    %16 = arith.muli %c0_i32, %c16_i32 : i32
    %17 = tpu.assume_multiple %16, 16 : i32
    %18 = arith.index_cast %17 : i32 to index
    %c0_12 = arith.constant 0 : index
    %19 = vector.load %arg7[%18, %c0_12] : memref<192x128xf32, #tpu.memory_space<vmem>>, vector<16x128xf32>
    %cst_13 = arith.constant dense<0.000000e+00> : vector<16x128xf32>
    %20 = tpu.matmul %14, %1, %cst_13 {dimension_numbers = #tpu.dot_dimension_numbers<[1], [0], [0], [1], [0, 0, 1, 1], [], []>} : vector<16x32xf32>, vector<32x128xf32>, vector<16x128xf32> -> vector<16x128xf32>
    %21 = arith.addf %19, %20 : vector<16x128xf32>
    %22 = vector.extract_strided_slice %21 {offsets = [0, 0], sizes = [16, 32], strides = [1, 1]} : vector<16x128xf32> to vector<16x32xf32>
    %23 = arith.negf %22 : vector<16x32xf32>
    %24 = math.exp %23 : vector<16x32xf32>
    %cst_14 = arith.constant 1.000000e+00 : f32
    %25 = vector.broadcast %cst_14 : f32 to vector<16x32xf32>
    %26 = arith.addf %25, %24 : vector<16x32xf32>
    %27 = arith.divf %25, %26 : vector<16x32xf32>
    %28 = vector.extract_strided_slice %21 {offsets = [0, 32], sizes = [16, 32], strides = [1, 1]} : vector<16x128xf32> to vector<16x32xf32>
    %29 = arith.negf %28 : vector<16x32xf32>
    %30 = math.exp %29 : vector<16x32xf32>
    %cst_15 = arith.constant 1.000000e+00 : f32
    %31 = vector.broadcast %cst_15 : f32 to vector<16x32xf32>
    %32 = arith.addf %31, %30 : vector<16x32xf32>
    %33 = arith.divf %31, %32 : vector<16x32xf32>
    %34 = vector.extract_strided_slice %21 {offsets = [0, 64], sizes = [16, 32], strides = [1, 1]} : vector<16x128xf32> to vector<16x32xf32>
    %35 = math.tanh %34 : vector<16x32xf32>
    %36 = vector.extract_strided_slice %21 {offsets = [0, 96], sizes = [16, 32], strides = [1, 1]} : vector<16x128xf32> to vector<16x32xf32>
    %37 = arith.negf %36 : vector<16x32xf32>
    %38 = math.exp %37 : vector<16x32xf32>
    %cst_16 = arith.constant 1.000000e+00 : f32
    %39 = vector.broadcast %cst_16 : f32 to vector<16x32xf32>
    %40 = arith.addf %39, %38 : vector<16x32xf32>
    %41 = arith.divf %39, %40 : vector<16x32xf32>
    %42 = arith.mulf %33, %15 : vector<16x32xf32>
    %43 = arith.mulf %27, %35 : vector<16x32xf32>
    %44 = arith.addf %42, %43 : vector<16x32xf32>
    %45 = math.tanh %44 : vector<16x32xf32>
    %46 = arith.mulf %41, %45 : vector<16x32xf32>
    %47 = vector.broadcast %c0_i32 : i32 to vector<16x1xi32>
    %48 = arith.cmpi slt, %47, %13 : vector<16x1xi32>
    %49 = vector.shape_cast %48 : vector<16x1xi1> to vector<16x1xi1>
    %50 = vector.broadcast %49 : vector<16x1xi1> to vector<16x32xi1>
    %51 = arith.select %50, %46, %14 : vector<16x32xi1>, vector<16x32xf32>
    %52 = vector.shape_cast %48 : vector<16x1xi1> to vector<16x1xi1>
    %53 = vector.broadcast %52 : vector<16x1xi1> to vector<16x32xi1>
    %54 = arith.select %53, %44, %15 : vector<16x32xi1>, vector<16x32xf32>
    %c1_i32 = arith.constant 1 : i32
    %c16_i32_17 = arith.constant 16 : i32
    %55 = arith.muli %c1_i32, %c16_i32_17 : i32
    %56 = tpu.assume_multiple %55, 16 : i32
    %57 = arith.index_cast %56 : i32 to index
    %c0_18 = arith.constant 0 : index
    %58 = vector.load %arg7[%57, %c0_18] : memref<192x128xf32, #tpu.memory_space<vmem>>, vector<16x128xf32>
    %cst_19 = arith.constant dense<0.000000e+00> : vector<16x128xf32>
    %59 = tpu.matmul %51, %1, %cst_19 {dimension_numbers = #tpu.dot_dimension_numbers<[1], [0], [0], [1], [0, 0, 1, 1], [], []>} : vector<16x32xf32>, vector<32x128xf32>, vector<16x128xf32> -> vector<16x128xf32>
    %60 = arith.addf %58, %59 : vector<16x128xf32>
    %61 = vector.extract_strided_slice %60 {offsets = [0, 0], sizes = [16, 32], strides = [1, 1]} : vector<16x128xf32> to vector<16x32xf32>
    %62 = arith.negf %61 : vector<16x32xf32>
    %63 = math.exp %62 : vector<16x32xf32>
    %cst_20 = arith.constant 1.000000e+00 : f32
    %64 = vector.broadcast %cst_20 : f32 to vector<16x32xf32>
    %65 = arith.addf %64, %63 : vector<16x32xf32>
    %66 = arith.divf %64, %65 : vector<16x32xf32>
    %67 = vector.extract_strided_slice %60 {offsets = [0, 32], sizes = [16, 32], strides = [1, 1]} : vector<16x128xf32> to vector<16x32xf32>
    %68 = arith.negf %67 : vector<16x32xf32>
    %69 = math.exp %68 : vector<16x32xf32>
    %cst_21 = arith.constant 1.000000e+00 : f32
    %70 = vector.broadcast %cst_21 : f32 to vector<16x32xf32>
    %71 = arith.addf %70, %69 : vector<16x32xf32>
    %72 = arith.divf %70, %71 : vector<16x32xf32>
    %73 = vector.extract_strided_slice %60 {offsets = [0, 64], sizes = [16, 32], strides = [1, 1]} : vector<16x128xf32> to vector<16x32xf32>
    %74 = math.tanh %73 : vector<16x32xf32>
    %75 = vector.extract_strided_slice %60 {offsets = [0, 96], sizes = [16, 32], strides = [1, 1]} : vector<16x128xf32> to vector<16x32xf32>
    %76 = arith.negf %75 : vector<16x32xf32>
    %77 = math.exp %76 : vector<16x32xf32>
    %cst_22 = arith.constant 1.000000e+00 : f32
    %78 = vector.broadcast %cst_22 : f32 to vector<16x32xf32>
    %79 = arith.addf %78, %77 : vector<16x32xf32>
    %80 = arith.divf %78, %79 : vector<16x32xf32>
    %81 = arith.mulf %72, %54 : vector<16x32xf32>
    %82 = arith.mulf %66, %74 : vector<16x32xf32>
    %83 = arith.addf %81, %82 : vector<16x32xf32>
    %84 = math.tanh %83 : vector<16x32xf32>
    %85 = arith.mulf %80, %84 : vector<16x32xf32>
    %86 = vector.broadcast %c1_i32 : i32 to vector<16x1xi32>
    %87 = arith.cmpi slt, %86, %13 : vector<16x1xi32>
    %88 = vector.shape_cast %87 : vector<16x1xi1> to vector<16x1xi1>
    %89 = vector.broadcast %88 : vector<16x1xi1> to vector<16x32xi1>
    %90 = arith.select %89, %85, %51 : vector<16x32xi1>, vector<16x32xf32>
    %91 = vector.shape_cast %87 : vector<16x1xi1> to vector<16x1xi1>
    %92 = vector.broadcast %91 : vector<16x1xi1> to vector<16x32xi1>
    %93 = arith.select %92, %83, %54 : vector<16x32xi1>, vector<16x32xf32>
    %c2_i32 = arith.constant 2 : i32
    %c16_i32_23 = arith.constant 16 : i32
    %94 = arith.muli %c2_i32, %c16_i32_23 : i32
    %95 = tpu.assume_multiple %94, 16 : i32
    %96 = arith.index_cast %95 : i32 to index
    %c0_24 = arith.constant 0 : index
    %97 = vector.load %arg7[%96, %c0_24] : memref<192x128xf32, #tpu.memory_space<vmem>>, vector<16x128xf32>
    %cst_25 = arith.constant dense<0.000000e+00> : vector<16x128xf32>
    %98 = tpu.matmul %90, %1, %cst_25 {dimension_numbers = #tpu.dot_dimension_numbers<[1], [0], [0], [1], [0, 0, 1, 1], [], []>} : vector<16x32xf32>, vector<32x128xf32>, vector<16x128xf32> -> vector<16x128xf32>
    %99 = arith.addf %97, %98 : vector<16x128xf32>
    %100 = vector.extract_strided_slice %99 {offsets = [0, 0], sizes = [16, 32], strides = [1, 1]} : vector<16x128xf32> to vector<16x32xf32>
    %101 = arith.negf %100 : vector<16x32xf32>
    %102 = math.exp %101 : vector<16x32xf32>
    %cst_26 = arith.constant 1.000000e+00 : f32
    %103 = vector.broadcast %cst_26 : f32 to vector<16x32xf32>
    %104 = arith.addf %103, %102 : vector<16x32xf32>
    %105 = arith.divf %103, %104 : vector<16x32xf32>
    %106 = vector.extract_strided_slice %99 {offsets = [0, 32], sizes = [16, 32], strides = [1, 1]} : vector<16x128xf32> to vector<16x32xf32>
    %107 = arith.negf %106 : vector<16x32xf32>
    %108 = math.exp %107 : vector<16x32xf32>
    %cst_27 = arith.constant 1.000000e+00 : f32
    %109 = vector.broadcast %cst_27 : f32 to vector<16x32xf32>
    %110 = arith.addf %109, %108 : vector<16x32xf32>
    %111 = arith.divf %109, %110 : vector<16x32xf32>
    %112 = vector.extract_strided_slice %99 {offsets = [0, 64], sizes = [16, 32], strides = [1, 1]} : vector<16x128xf32> to vector<16x32xf32>
    %113 = math.tanh %112 : vector<16x32xf32>
    %114 = vector.extract_strided_slice %99 {offsets = [0, 96], sizes = [16, 32], strides = [1, 1]} : vector<16x128xf32> to vector<16x32xf32>
    %115 = arith.negf %114 : vector<16x32xf32>
    %116 = math.exp %115 : vector<16x32xf32>
    %cst_28 = arith.constant 1.000000e+00 : f32
    %117 = vector.broadcast %cst_28 : f32 to vector<16x32xf32>
    %118 = arith.addf %117, %116 : vector<16x32xf32>
    %119 = arith.divf %117, %118 : vector<16x32xf32>
    %120 = arith.mulf %111, %93 : vector<16x32xf32>
    %121 = arith.mulf %105, %113 : vector<16x32xf32>
    %122 = arith.addf %120, %121 : vector<16x32xf32>
    %123 = math.tanh %122 : vector<16x32xf32>
    %124 = arith.mulf %119, %123 : vector<16x32xf32>
    %125 = vector.broadcast %c2_i32 : i32 to vector<16x1xi32>
    %126 = arith.cmpi slt, %125, %13 : vector<16x1xi32>
    %127 = vector.shape_cast %126 : vector<16x1xi1> to vector<16x1xi1>
    %128 = vector.broadcast %127 : vector<16x1xi1> to vector<16x32xi1>
    %129 = arith.select %128, %124, %90 : vector<16x32xi1>, vector<16x32xf32>
    %130 = vector.shape_cast %126 : vector<16x1xi1> to vector<16x1xi1>
    %131 = vector.broadcast %130 : vector<16x1xi1> to vector<16x32xi1>
    %132 = arith.select %131, %122, %93 : vector<16x32xi1>, vector<16x32xf32>
    %c3_i32 = arith.constant 3 : i32
    %c16_i32_29 = arith.constant 16 : i32
    %133 = arith.muli %c3_i32, %c16_i32_29 : i32
    %134 = tpu.assume_multiple %133, 16 : i32
    %135 = arith.index_cast %134 : i32 to index
    %c0_30 = arith.constant 0 : index
    %136 = vector.load %arg7[%135, %c0_30] : memref<192x128xf32, #tpu.memory_space<vmem>>, vector<16x128xf32>
    %cst_31 = arith.constant dense<0.000000e+00> : vector<16x128xf32>
    %137 = tpu.matmul %129, %1, %cst_31 {dimension_numbers = #tpu.dot_dimension_numbers<[1], [0], [0], [1], [0, 0, 1, 1], [], []>} : vector<16x32xf32>, vector<32x128xf32>, vector<16x128xf32> -> vector<16x128xf32>
    %138 = arith.addf %136, %137 : vector<16x128xf32>
    %139 = vector.extract_strided_slice %138 {offsets = [0, 0], sizes = [16, 32], strides = [1, 1]} : vector<16x128xf32> to vector<16x32xf32>
    %140 = arith.negf %139 : vector<16x32xf32>
    %141 = math.exp %140 : vector<16x32xf32>
    %cst_32 = arith.constant 1.000000e+00 : f32
    %142 = vector.broadcast %cst_32 : f32 to vector<16x32xf32>
    %143 = arith.addf %142, %141 : vector<16x32xf32>
    %144 = arith.divf %142, %143 : vector<16x32xf32>
    %145 = vector.extract_strided_slice %138 {offsets = [0, 32], sizes = [16, 32], strides = [1, 1]} : vector<16x128xf32> to vector<16x32xf32>
    %146 = arith.negf %145 : vector<16x32xf32>
    %147 = math.exp %146 : vector<16x32xf32>
    %cst_33 = arith.constant 1.000000e+00 : f32
    %148 = vector.broadcast %cst_33 : f32 to vector<16x32xf32>
    %149 = arith.addf %148, %147 : vector<16x32xf32>
    %150 = arith.divf %148, %149 : vector<16x32xf32>
    %151 = vector.extract_strided_slice %138 {offsets = [0, 64], sizes = [16, 32], strides = [1, 1]} : vector<16x128xf32> to vector<16x32xf32>
    %152 = math.tanh %151 : vector<16x32xf32>
    %153 = vector.extract_strided_slice %138 {offsets = [0, 96], sizes = [16, 32], strides = [1, 1]} : vector<16x128xf32> to vector<16x32xf32>
    %154 = arith.negf %153 : vector<16x32xf32>
    %155 = math.exp %154 : vector<16x32xf32>
    %cst_34 = arith.constant 1.000000e+00 : f32
    %156 = vector.broadcast %cst_34 : f32 to vector<16x32xf32>
    %157 = arith.addf %156, %155 : vector<16x32xf32>
    %158 = arith.divf %156, %157 : vector<16x32xf32>
    %159 = arith.mulf %150, %132 : vector<16x32xf32>
    %160 = arith.mulf %144, %152 : vector<16x32xf32>
    %161 = arith.addf %159, %160 : vector<16x32xf32>
    %162 = math.tanh %161 : vector<16x32xf32>
    %163 = arith.mulf %158, %162 : vector<16x32xf32>
    %164 = vector.broadcast %c3_i32 : i32 to vector<16x1xi32>
    %165 = arith.cmpi slt, %164, %13 : vector<16x1xi32>
    %166 = vector.shape_cast %165 : vector<16x1xi1> to vector<16x1xi1>
    %167 = vector.broadcast %166 : vector<16x1xi1> to vector<16x32xi1>
    %168 = arith.select %167, %163, %129 : vector<16x32xi1>, vector<16x32xf32>
    %169 = vector.shape_cast %165 : vector<16x1xi1> to vector<16x1xi1>
    %170 = vector.broadcast %169 : vector<16x1xi1> to vector<16x32xi1>
    %171 = arith.select %170, %161, %132 : vector<16x32xi1>, vector<16x32xf32>
    %c4_i32 = arith.constant 4 : i32
    %c16_i32_35 = arith.constant 16 : i32
    %172 = arith.muli %c4_i32, %c16_i32_35 : i32
    %173 = tpu.assume_multiple %172, 16 : i32
    %174 = arith.index_cast %173 : i32 to index
    %c0_36 = arith.constant 0 : index
    %175 = vector.load %arg7[%174, %c0_36] : memref<192x128xf32, #tpu.memory_space<vmem>>, vector<16x128xf32>
    %cst_37 = arith.constant dense<0.000000e+00> : vector<16x128xf32>
    %176 = tpu.matmul %168, %1, %cst_37 {dimension_numbers = #tpu.dot_dimension_numbers<[1], [0], [0], [1], [0, 0, 1, 1], [], []>} : vector<16x32xf32>, vector<32x128xf32>, vector<16x128xf32> -> vector<16x128xf32>
    %177 = arith.addf %175, %176 : vector<16x128xf32>
    %178 = vector.extract_strided_slice %177 {offsets = [0, 0], sizes = [16, 32], strides = [1, 1]} : vector<16x128xf32> to vector<16x32xf32>
    %179 = arith.negf %178 : vector<16x32xf32>
    %180 = math.exp %179 : vector<16x32xf32>
    %cst_38 = arith.constant 1.000000e+00 : f32
    %181 = vector.broadcast %cst_38 : f32 to vector<16x32xf32>
    %182 = arith.addf %181, %180 : vector<16x32xf32>
    %183 = arith.divf %181, %182 : vector<16x32xf32>
    %184 = vector.extract_strided_slice %177 {offsets = [0, 32], sizes = [16, 32], strides = [1, 1]} : vector<16x128xf32> to vector<16x32xf32>
    %185 = arith.negf %184 : vector<16x32xf32>
    %186 = math.exp %185 : vector<16x32xf32>
    %cst_39 = arith.constant 1.000000e+00 : f32
    %187 = vector.broadcast %cst_39 : f32 to vector<16x32xf32>
    %188 = arith.addf %187, %186 : vector<16x32xf32>
    %189 = arith.divf %187, %188 : vector<16x32xf32>
    %190 = vector.extract_strided_slice %177 {offsets = [0, 64], sizes = [16, 32], strides = [1, 1]} : vector<16x128xf32> to vector<16x32xf32>
    %191 = math.tanh %190 : vector<16x32xf32>
    %192 = vector.extract_strided_slice %177 {offsets = [0, 96], sizes = [16, 32], strides = [1, 1]} : vector<16x128xf32> to vector<16x32xf32>
    %193 = arith.negf %192 : vector<16x32xf32>
    %194 = math.exp %193 : vector<16x32xf32>
    %cst_40 = arith.constant 1.000000e+00 : f32
    %195 = vector.broadcast %cst_40 : f32 to vector<16x32xf32>
    %196 = arith.addf %195, %194 : vector<16x32xf32>
    %197 = arith.divf %195, %196 : vector<16x32xf32>
    %198 = arith.mulf %189, %171 : vector<16x32xf32>
    %199 = arith.mulf %183, %191 : vector<16x32xf32>
    %200 = arith.addf %198, %199 : vector<16x32xf32>
    %201 = math.tanh %200 : vector<16x32xf32>
    %202 = arith.mulf %197, %201 : vector<16x32xf32>
    %203 = vector.broadcast %c4_i32 : i32 to vector<16x1xi32>
    %204 = arith.cmpi slt, %203, %13 : vector<16x1xi32>
    %205 = vector.shape_cast %204 : vector<16x1xi1> to vector<16x1xi1>
    %206 = vector.broadcast %205 : vector<16x1xi1> to vector<16x32xi1>
    %207 = arith.select %206, %202, %168 : vector<16x32xi1>, vector<16x32xf32>
    %208 = vector.shape_cast %204 : vector<16x1xi1> to vector<16x1xi1>
    %209 = vector.broadcast %208 : vector<16x1xi1> to vector<16x32xi1>
    %210 = arith.select %209, %200, %171 : vector<16x32xi1>, vector<16x32xf32>
    %c5_i32 = arith.constant 5 : i32
    %c16_i32_41 = arith.constant 16 : i32
    %211 = arith.muli %c5_i32, %c16_i32_41 : i32
    %212 = tpu.assume_multiple %211, 16 : i32
    %213 = arith.index_cast %212 : i32 to index
    %c0_42 = arith.constant 0 : index
    %214 = vector.load %arg7[%213, %c0_42] : memref<192x128xf32, #tpu.memory_space<vmem>>, vector<16x128xf32>
    %cst_43 = arith.constant dense<0.000000e+00> : vector<16x128xf32>
    %215 = tpu.matmul %207, %1, %cst_43 {dimension_numbers = #tpu.dot_dimension_numbers<[1], [0], [0], [1], [0, 0, 1, 1], [], []>} : vector<16x32xf32>, vector<32x128xf32>, vector<16x128xf32> -> vector<16x128xf32>
    %216 = arith.addf %214, %215 : vector<16x128xf32>
    %217 = vector.extract_strided_slice %216 {offsets = [0, 0], sizes = [16, 32], strides = [1, 1]} : vector<16x128xf32> to vector<16x32xf32>
    %218 = arith.negf %217 : vector<16x32xf32>
    %219 = math.exp %218 : vector<16x32xf32>
    %cst_44 = arith.constant 1.000000e+00 : f32
    %220 = vector.broadcast %cst_44 : f32 to vector<16x32xf32>
    %221 = arith.addf %220, %219 : vector<16x32xf32>
    %222 = arith.divf %220, %221 : vector<16x32xf32>
    %223 = vector.extract_strided_slice %216 {offsets = [0, 32], sizes = [16, 32], strides = [1, 1]} : vector<16x128xf32> to vector<16x32xf32>
    %224 = arith.negf %223 : vector<16x32xf32>
    %225 = math.exp %224 : vector<16x32xf32>
    %cst_45 = arith.constant 1.000000e+00 : f32
    %226 = vector.broadcast %cst_45 : f32 to vector<16x32xf32>
    %227 = arith.addf %226, %225 : vector<16x32xf32>
    %228 = arith.divf %226, %227 : vector<16x32xf32>
    %229 = vector.extract_strided_slice %216 {offsets = [0, 64], sizes = [16, 32], strides = [1, 1]} : vector<16x128xf32> to vector<16x32xf32>
    %230 = math.tanh %229 : vector<16x32xf32>
    %231 = vector.extract_strided_slice %216 {offsets = [0, 96], sizes = [16, 32], strides = [1, 1]} : vector<16x128xf32> to vector<16x32xf32>
    %232 = arith.negf %231 : vector<16x32xf32>
    %233 = math.exp %232 : vector<16x32xf32>
    %cst_46 = arith.constant 1.000000e+00 : f32
    %234 = vector.broadcast %cst_46 : f32 to vector<16x32xf32>
    %235 = arith.addf %234, %233 : vector<16x32xf32>
    %236 = arith.divf %234, %235 : vector<16x32xf32>
    %237 = arith.mulf %228, %210 : vector<16x32xf32>
    %238 = arith.mulf %222, %230 : vector<16x32xf32>
    %239 = arith.addf %237, %238 : vector<16x32xf32>
    %240 = math.tanh %239 : vector<16x32xf32>
    %241 = arith.mulf %236, %240 : vector<16x32xf32>
    %242 = vector.broadcast %c5_i32 : i32 to vector<16x1xi32>
    %243 = arith.cmpi slt, %242, %13 : vector<16x1xi32>
    %244 = vector.shape_cast %243 : vector<16x1xi1> to vector<16x1xi1>
    %245 = vector.broadcast %244 : vector<16x1xi1> to vector<16x32xi1>
    %246 = arith.select %245, %241, %207 : vector<16x32xi1>, vector<16x32xf32>
    %247 = vector.shape_cast %243 : vector<16x1xi1> to vector<16x1xi1>
    %248 = vector.broadcast %247 : vector<16x1xi1> to vector<16x32xi1>
    %249 = arith.select %248, %239, %210 : vector<16x32xi1>, vector<16x32xf32>
    %c6_i32 = arith.constant 6 : i32
    %c16_i32_47 = arith.constant 16 : i32
    %250 = arith.muli %c6_i32, %c16_i32_47 : i32
    %251 = tpu.assume_multiple %250, 16 : i32
    %252 = arith.index_cast %251 : i32 to index
    %c0_48 = arith.constant 0 : index
    %253 = vector.load %arg7[%252, %c0_48] : memref<192x128xf32, #tpu.memory_space<vmem>>, vector<16x128xf32>
    %cst_49 = arith.constant dense<0.000000e+00> : vector<16x128xf32>
    %254 = tpu.matmul %246, %1, %cst_49 {dimension_numbers = #tpu.dot_dimension_numbers<[1], [0], [0], [1], [0, 0, 1, 1], [], []>} : vector<16x32xf32>, vector<32x128xf32>, vector<16x128xf32> -> vector<16x128xf32>
    %255 = arith.addf %253, %254 : vector<16x128xf32>
    %256 = vector.extract_strided_slice %255 {offsets = [0, 0], sizes = [16, 32], strides = [1, 1]} : vector<16x128xf32> to vector<16x32xf32>
    %257 = arith.negf %256 : vector<16x32xf32>
    %258 = math.exp %257 : vector<16x32xf32>
    %cst_50 = arith.constant 1.000000e+00 : f32
    %259 = vector.broadcast %cst_50 : f32 to vector<16x32xf32>
    %260 = arith.addf %259, %258 : vector<16x32xf32>
    %261 = arith.divf %259, %260 : vector<16x32xf32>
    %262 = vector.extract_strided_slice %255 {offsets = [0, 32], sizes = [16, 32], strides = [1, 1]} : vector<16x128xf32> to vector<16x32xf32>
    %263 = arith.negf %262 : vector<16x32xf32>
    %264 = math.exp %263 : vector<16x32xf32>
    %cst_51 = arith.constant 1.000000e+00 : f32
    %265 = vector.broadcast %cst_51 : f32 to vector<16x32xf32>
    %266 = arith.addf %265, %264 : vector<16x32xf32>
    %267 = arith.divf %265, %266 : vector<16x32xf32>
    %268 = vector.extract_strided_slice %255 {offsets = [0, 64], sizes = [16, 32], strides = [1, 1]} : vector<16x128xf32> to vector<16x32xf32>
    %269 = math.tanh %268 : vector<16x32xf32>
    %270 = vector.extract_strided_slice %255 {offsets = [0, 96], sizes = [16, 32], strides = [1, 1]} : vector<16x128xf32> to vector<16x32xf32>
    %271 = arith.negf %270 : vector<16x32xf32>
    %272 = math.exp %271 : vector<16x32xf32>
    %cst_52 = arith.constant 1.000000e+00 : f32
    %273 = vector.broadcast %cst_52 : f32 to vector<16x32xf32>
    %274 = arith.addf %273, %272 : vector<16x32xf32>
    %275 = arith.divf %273, %274 : vector<16x32xf32>
    %276 = arith.mulf %267, %249 : vector<16x32xf32>
    %277 = arith.mulf %261, %269 : vector<16x32xf32>
    %278 = arith.addf %276, %277 : vector<16x32xf32>
    %279 = math.tanh %278 : vector<16x32xf32>
    %280 = arith.mulf %275, %279 : vector<16x32xf32>
    %281 = vector.broadcast %c6_i32 : i32 to vector<16x1xi32>
    %282 = arith.cmpi slt, %281, %13 : vector<16x1xi32>
    %283 = vector.shape_cast %282 : vector<16x1xi1> to vector<16x1xi1>
    %284 = vector.broadcast %283 : vector<16x1xi1> to vector<16x32xi1>
    %285 = arith.select %284, %280, %246 : vector<16x32xi1>, vector<16x32xf32>
    %286 = vector.shape_cast %282 : vector<16x1xi1> to vector<16x1xi1>
    %287 = vector.broadcast %286 : vector<16x1xi1> to vector<16x32xi1>
    %288 = arith.select %287, %278, %249 : vector<16x32xi1>, vector<16x32xf32>
    %c7_i32 = arith.constant 7 : i32
    %c16_i32_53 = arith.constant 16 : i32
    %289 = arith.muli %c7_i32, %c16_i32_53 : i32
    %290 = tpu.assume_multiple %289, 16 : i32
    %291 = arith.index_cast %290 : i32 to index
    %c0_54 = arith.constant 0 : index
    %292 = vector.load %arg7[%291, %c0_54] : memref<192x128xf32, #tpu.memory_space<vmem>>, vector<16x128xf32>
    %cst_55 = arith.constant dense<0.000000e+00> : vector<16x128xf32>
    %293 = tpu.matmul %285, %1, %cst_55 {dimension_numbers = #tpu.dot_dimension_numbers<[1], [0], [0], [1], [0, 0, 1, 1], [], []>} : vector<16x32xf32>, vector<32x128xf32>, vector<16x128xf32> -> vector<16x128xf32>
    %294 = arith.addf %292, %293 : vector<16x128xf32>
    %295 = vector.extract_strided_slice %294 {offsets = [0, 0], sizes = [16, 32], strides = [1, 1]} : vector<16x128xf32> to vector<16x32xf32>
    %296 = arith.negf %295 : vector<16x32xf32>
    %297 = math.exp %296 : vector<16x32xf32>
    %cst_56 = arith.constant 1.000000e+00 : f32
    %298 = vector.broadcast %cst_56 : f32 to vector<16x32xf32>
    %299 = arith.addf %298, %297 : vector<16x32xf32>
    %300 = arith.divf %298, %299 : vector<16x32xf32>
    %301 = vector.extract_strided_slice %294 {offsets = [0, 32], sizes = [16, 32], strides = [1, 1]} : vector<16x128xf32> to vector<16x32xf32>
    %302 = arith.negf %301 : vector<16x32xf32>
    %303 = math.exp %302 : vector<16x32xf32>
    %cst_57 = arith.constant 1.000000e+00 : f32
    %304 = vector.broadcast %cst_57 : f32 to vector<16x32xf32>
    %305 = arith.addf %304, %303 : vector<16x32xf32>
    %306 = arith.divf %304, %305 : vector<16x32xf32>
    %307 = vector.extract_strided_slice %294 {offsets = [0, 64], sizes = [16, 32], strides = [1, 1]} : vector<16x128xf32> to vector<16x32xf32>
    %308 = math.tanh %307 : vector<16x32xf32>
    %309 = vector.extract_strided_slice %294 {offsets = [0, 96], sizes = [16, 32], strides = [1, 1]} : vector<16x128xf32> to vector<16x32xf32>
    %310 = arith.negf %309 : vector<16x32xf32>
    %311 = math.exp %310 : vector<16x32xf32>
    %cst_58 = arith.constant 1.000000e+00 : f32
    %312 = vector.broadcast %cst_58 : f32 to vector<16x32xf32>
    %313 = arith.addf %312, %311 : vector<16x32xf32>
    %314 = arith.divf %312, %313 : vector<16x32xf32>
    %315 = arith.mulf %306, %288 : vector<16x32xf32>
    %316 = arith.mulf %300, %308 : vector<16x32xf32>
    %317 = arith.addf %315, %316 : vector<16x32xf32>
    %318 = math.tanh %317 : vector<16x32xf32>
    %319 = arith.mulf %314, %318 : vector<16x32xf32>
    %320 = vector.broadcast %c7_i32 : i32 to vector<16x1xi32>
    %321 = arith.cmpi slt, %320, %13 : vector<16x1xi32>
    %322 = vector.shape_cast %321 : vector<16x1xi1> to vector<16x1xi1>
    %323 = vector.broadcast %322 : vector<16x1xi1> to vector<16x32xi1>
    %324 = arith.select %323, %319, %285 : vector<16x32xi1>, vector<16x32xf32>
    %325 = vector.shape_cast %321 : vector<16x1xi1> to vector<16x1xi1>
    %326 = vector.broadcast %325 : vector<16x1xi1> to vector<16x32xi1>
    %327 = arith.select %326, %317, %288 : vector<16x32xi1>, vector<16x32xf32>
    %c8_i32_59 = arith.constant 8 : i32
    %c16_i32_60 = arith.constant 16 : i32
    %328 = arith.muli %c8_i32_59, %c16_i32_60 : i32
    %329 = tpu.assume_multiple %328, 16 : i32
    %330 = arith.index_cast %329 : i32 to index
    %c0_61 = arith.constant 0 : index
    %331 = vector.load %arg7[%330, %c0_61] : memref<192x128xf32, #tpu.memory_space<vmem>>, vector<16x128xf32>
    %cst_62 = arith.constant dense<0.000000e+00> : vector<16x128xf32>
    %332 = tpu.matmul %324, %1, %cst_62 {dimension_numbers = #tpu.dot_dimension_numbers<[1], [0], [0], [1], [0, 0, 1, 1], [], []>} : vector<16x32xf32>, vector<32x128xf32>, vector<16x128xf32> -> vector<16x128xf32>
    %333 = arith.addf %331, %332 : vector<16x128xf32>
    %334 = vector.extract_strided_slice %333 {offsets = [0, 0], sizes = [16, 32], strides = [1, 1]} : vector<16x128xf32> to vector<16x32xf32>
    %335 = arith.negf %334 : vector<16x32xf32>
    %336 = math.exp %335 : vector<16x32xf32>
    %cst_63 = arith.constant 1.000000e+00 : f32
    %337 = vector.broadcast %cst_63 : f32 to vector<16x32xf32>
    %338 = arith.addf %337, %336 : vector<16x32xf32>
    %339 = arith.divf %337, %338 : vector<16x32xf32>
    %340 = vector.extract_strided_slice %333 {offsets = [0, 32], sizes = [16, 32], strides = [1, 1]} : vector<16x128xf32> to vector<16x32xf32>
    %341 = arith.negf %340 : vector<16x32xf32>
    %342 = math.exp %341 : vector<16x32xf32>
    %cst_64 = arith.constant 1.000000e+00 : f32
    %343 = vector.broadcast %cst_64 : f32 to vector<16x32xf32>
    %344 = arith.addf %343, %342 : vector<16x32xf32>
    %345 = arith.divf %343, %344 : vector<16x32xf32>
    %346 = vector.extract_strided_slice %333 {offsets = [0, 64], sizes = [16, 32], strides = [1, 1]} : vector<16x128xf32> to vector<16x32xf32>
    %347 = math.tanh %346 : vector<16x32xf32>
    %348 = vector.extract_strided_slice %333 {offsets = [0, 96], sizes = [16, 32], strides = [1, 1]} : vector<16x128xf32> to vector<16x32xf32>
    %349 = arith.negf %348 : vector<16x32xf32>
    %350 = math.exp %349 : vector<16x32xf32>
    %cst_65 = arith.constant 1.000000e+00 : f32
    %351 = vector.broadcast %cst_65 : f32 to vector<16x32xf32>
    %352 = arith.addf %351, %350 : vector<16x32xf32>
    %353 = arith.divf %351, %352 : vector<16x32xf32>
    %354 = arith.mulf %345, %327 : vector<16x32xf32>
    %355 = arith.mulf %339, %347 : vector<16x32xf32>
    %356 = arith.addf %354, %355 : vector<16x32xf32>
    %357 = math.tanh %356 : vector<16x32xf32>
    %358 = arith.mulf %353, %357 : vector<16x32xf32>
    %359 = vector.broadcast %c8_i32_59 : i32 to vector<16x1xi32>
    %360 = arith.cmpi slt, %359, %13 : vector<16x1xi32>
    %361 = vector.shape_cast %360 : vector<16x1xi1> to vector<16x1xi1>
    %362 = vector.broadcast %361 : vector<16x1xi1> to vector<16x32xi1>
    %363 = arith.select %362, %358, %324 : vector<16x32xi1>, vector<16x32xf32>
    %364 = vector.shape_cast %360 : vector<16x1xi1> to vector<16x1xi1>
    %365 = vector.broadcast %364 : vector<16x1xi1> to vector<16x32xi1>
    %366 = arith.select %365, %356, %327 : vector<16x32xi1>, vector<16x32xf32>
    %c9_i32 = arith.constant 9 : i32
    %c16_i32_66 = arith.constant 16 : i32
    %367 = arith.muli %c9_i32, %c16_i32_66 : i32
    %368 = tpu.assume_multiple %367, 16 : i32
    %369 = arith.index_cast %368 : i32 to index
    %c0_67 = arith.constant 0 : index
    %370 = vector.load %arg7[%369, %c0_67] : memref<192x128xf32, #tpu.memory_space<vmem>>, vector<16x128xf32>
    %cst_68 = arith.constant dense<0.000000e+00> : vector<16x128xf32>
    %371 = tpu.matmul %363, %1, %cst_68 {dimension_numbers = #tpu.dot_dimension_numbers<[1], [0], [0], [1], [0, 0, 1, 1], [], []>} : vector<16x32xf32>, vector<32x128xf32>, vector<16x128xf32> -> vector<16x128xf32>
    %372 = arith.addf %370, %371 : vector<16x128xf32>
    %373 = vector.extract_strided_slice %372 {offsets = [0, 0], sizes = [16, 32], strides = [1, 1]} : vector<16x128xf32> to vector<16x32xf32>
    %374 = arith.negf %373 : vector<16x32xf32>
    %375 = math.exp %374 : vector<16x32xf32>
    %cst_69 = arith.constant 1.000000e+00 : f32
    %376 = vector.broadcast %cst_69 : f32 to vector<16x32xf32>
    %377 = arith.addf %376, %375 : vector<16x32xf32>
    %378 = arith.divf %376, %377 : vector<16x32xf32>
    %379 = vector.extract_strided_slice %372 {offsets = [0, 32], sizes = [16, 32], strides = [1, 1]} : vector<16x128xf32> to vector<16x32xf32>
    %380 = arith.negf %379 : vector<16x32xf32>
    %381 = math.exp %380 : vector<16x32xf32>
    %cst_70 = arith.constant 1.000000e+00 : f32
    %382 = vector.broadcast %cst_70 : f32 to vector<16x32xf32>
    %383 = arith.addf %382, %381 : vector<16x32xf32>
    %384 = arith.divf %382, %383 : vector<16x32xf32>
    %385 = vector.extract_strided_slice %372 {offsets = [0, 64], sizes = [16, 32], strides = [1, 1]} : vector<16x128xf32> to vector<16x32xf32>
    %386 = math.tanh %385 : vector<16x32xf32>
    %387 = vector.extract_strided_slice %372 {offsets = [0, 96], sizes = [16, 32], strides = [1, 1]} : vector<16x128xf32> to vector<16x32xf32>
    %388 = arith.negf %387 : vector<16x32xf32>
    %389 = math.exp %388 : vector<16x32xf32>
    %cst_71 = arith.constant 1.000000e+00 : f32
    %390 = vector.broadcast %cst_71 : f32 to vector<16x32xf32>
    %391 = arith.addf %390, %389 : vector<16x32xf32>
    %392 = arith.divf %390, %391 : vector<16x32xf32>
    %393 = arith.mulf %384, %366 : vector<16x32xf32>
    %394 = arith.mulf %378, %386 : vector<16x32xf32>
    %395 = arith.addf %393, %394 : vector<16x32xf32>
    %396 = math.tanh %395 : vector<16x32xf32>
    %397 = arith.mulf %392, %396 : vector<16x32xf32>
    %398 = vector.broadcast %c9_i32 : i32 to vector<16x1xi32>
    %399 = arith.cmpi slt, %398, %13 : vector<16x1xi32>
    %400 = vector.shape_cast %399 : vector<16x1xi1> to vector<16x1xi1>
    %401 = vector.broadcast %400 : vector<16x1xi1> to vector<16x32xi1>
    %402 = arith.select %401, %397, %363 : vector<16x32xi1>, vector<16x32xf32>
    %403 = vector.shape_cast %399 : vector<16x1xi1> to vector<16x1xi1>
    %404 = vector.broadcast %403 : vector<16x1xi1> to vector<16x32xi1>
    %405 = arith.select %404, %395, %366 : vector<16x32xi1>, vector<16x32xf32>
    %c10_i32 = arith.constant 10 : i32
    %c16_i32_72 = arith.constant 16 : i32
    %406 = arith.muli %c10_i32, %c16_i32_72 : i32
    %407 = tpu.assume_multiple %406, 16 : i32
    %408 = arith.index_cast %407 : i32 to index
    %c0_73 = arith.constant 0 : index
    %409 = vector.load %arg7[%408, %c0_73] : memref<192x128xf32, #tpu.memory_space<vmem>>, vector<16x128xf32>
    %cst_74 = arith.constant dense<0.000000e+00> : vector<16x128xf32>
    %410 = tpu.matmul %402, %1, %cst_74 {dimension_numbers = #tpu.dot_dimension_numbers<[1], [0], [0], [1], [0, 0, 1, 1], [], []>} : vector<16x32xf32>, vector<32x128xf32>, vector<16x128xf32> -> vector<16x128xf32>
    %411 = arith.addf %409, %410 : vector<16x128xf32>
    %412 = vector.extract_strided_slice %411 {offsets = [0, 0], sizes = [16, 32], strides = [1, 1]} : vector<16x128xf32> to vector<16x32xf32>
    %413 = arith.negf %412 : vector<16x32xf32>
    %414 = math.exp %413 : vector<16x32xf32>
    %cst_75 = arith.constant 1.000000e+00 : f32
    %415 = vector.broadcast %cst_75 : f32 to vector<16x32xf32>
    %416 = arith.addf %415, %414 : vector<16x32xf32>
    %417 = arith.divf %415, %416 : vector<16x32xf32>
    %418 = vector.extract_strided_slice %411 {offsets = [0, 32], sizes = [16, 32], strides = [1, 1]} : vector<16x128xf32> to vector<16x32xf32>
    %419 = arith.negf %418 : vector<16x32xf32>
    %420 = math.exp %419 : vector<16x32xf32>
    %cst_76 = arith.constant 1.000000e+00 : f32
    %421 = vector.broadcast %cst_76 : f32 to vector<16x32xf32>
    %422 = arith.addf %421, %420 : vector<16x32xf32>
    %423 = arith.divf %421, %422 : vector<16x32xf32>
    %424 = vector.extract_strided_slice %411 {offsets = [0, 64], sizes = [16, 32], strides = [1, 1]} : vector<16x128xf32> to vector<16x32xf32>
    %425 = math.tanh %424 : vector<16x32xf32>
    %426 = vector.extract_strided_slice %411 {offsets = [0, 96], sizes = [16, 32], strides = [1, 1]} : vector<16x128xf32> to vector<16x32xf32>
    %427 = arith.negf %426 : vector<16x32xf32>
    %428 = math.exp %427 : vector<16x32xf32>
    %cst_77 = arith.constant 1.000000e+00 : f32
    %429 = vector.broadcast %cst_77 : f32 to vector<16x32xf32>
    %430 = arith.addf %429, %428 : vector<16x32xf32>
    %431 = arith.divf %429, %430 : vector<16x32xf32>
    %432 = arith.mulf %423, %405 : vector<16x32xf32>
    %433 = arith.mulf %417, %425 : vector<16x32xf32>
    %434 = arith.addf %432, %433 : vector<16x32xf32>
    %435 = math.tanh %434 : vector<16x32xf32>
    %436 = arith.mulf %431, %435 : vector<16x32xf32>
    %437 = vector.broadcast %c10_i32 : i32 to vector<16x1xi32>
    %438 = arith.cmpi slt, %437, %13 : vector<16x1xi32>
    %439 = vector.shape_cast %438 : vector<16x1xi1> to vector<16x1xi1>
    %440 = vector.broadcast %439 : vector<16x1xi1> to vector<16x32xi1>
    %441 = arith.select %440, %436, %402 : vector<16x32xi1>, vector<16x32xf32>
    %442 = vector.shape_cast %438 : vector<16x1xi1> to vector<16x1xi1>
    %443 = vector.broadcast %442 : vector<16x1xi1> to vector<16x32xi1>
    %444 = arith.select %443, %434, %405 : vector<16x32xi1>, vector<16x32xf32>
    %c11_i32 = arith.constant 11 : i32
    %c16_i32_78 = arith.constant 16 : i32
    %445 = arith.muli %c11_i32, %c16_i32_78 : i32
    %446 = tpu.assume_multiple %445, 16 : i32
    %447 = arith.index_cast %446 : i32 to index
    %c0_79 = arith.constant 0 : index
    %448 = vector.load %arg7[%447, %c0_79] : memref<192x128xf32, #tpu.memory_space<vmem>>, vector<16x128xf32>
    %cst_80 = arith.constant dense<0.000000e+00> : vector<16x128xf32>
    %449 = tpu.matmul %441, %1, %cst_80 {dimension_numbers = #tpu.dot_dimension_numbers<[1], [0], [0], [1], [0, 0, 1, 1], [], []>} : vector<16x32xf32>, vector<32x128xf32>, vector<16x128xf32> -> vector<16x128xf32>
    %450 = arith.addf %448, %449 : vector<16x128xf32>
    %451 = vector.extract_strided_slice %450 {offsets = [0, 0], sizes = [16, 32], strides = [1, 1]} : vector<16x128xf32> to vector<16x32xf32>
    %452 = arith.negf %451 : vector<16x32xf32>
    %453 = math.exp %452 : vector<16x32xf32>
    %cst_81 = arith.constant 1.000000e+00 : f32
    %454 = vector.broadcast %cst_81 : f32 to vector<16x32xf32>
    %455 = arith.addf %454, %453 : vector<16x32xf32>
    %456 = arith.divf %454, %455 : vector<16x32xf32>
    %457 = vector.extract_strided_slice %450 {offsets = [0, 32], sizes = [16, 32], strides = [1, 1]} : vector<16x128xf32> to vector<16x32xf32>
    %458 = arith.negf %457 : vector<16x32xf32>
    %459 = math.exp %458 : vector<16x32xf32>
    %cst_82 = arith.constant 1.000000e+00 : f32
    %460 = vector.broadcast %cst_82 : f32 to vector<16x32xf32>
    %461 = arith.addf %460, %459 : vector<16x32xf32>
    %462 = arith.divf %460, %461 : vector<16x32xf32>
    %463 = vector.extract_strided_slice %450 {offsets = [0, 64], sizes = [16, 32], strides = [1, 1]} : vector<16x128xf32> to vector<16x32xf32>
    %464 = math.tanh %463 : vector<16x32xf32>
    %465 = vector.extract_strided_slice %450 {offsets = [0, 96], sizes = [16, 32], strides = [1, 1]} : vector<16x128xf32> to vector<16x32xf32>
    %466 = arith.negf %465 : vector<16x32xf32>
    %467 = math.exp %466 : vector<16x32xf32>
    %cst_83 = arith.constant 1.000000e+00 : f32
    %468 = vector.broadcast %cst_83 : f32 to vector<16x32xf32>
    %469 = arith.addf %468, %467 : vector<16x32xf32>
    %470 = arith.divf %468, %469 : vector<16x32xf32>
    %471 = arith.mulf %462, %444 : vector<16x32xf32>
    %472 = arith.mulf %456, %464 : vector<16x32xf32>
    %473 = arith.addf %471, %472 : vector<16x32xf32>
    %474 = math.tanh %473 : vector<16x32xf32>
    %475 = arith.mulf %470, %474 : vector<16x32xf32>
    %476 = vector.broadcast %c11_i32 : i32 to vector<16x1xi32>
    %477 = arith.cmpi slt, %476, %13 : vector<16x1xi32>
    %478 = vector.shape_cast %477 : vector<16x1xi1> to vector<16x1xi1>
    %479 = vector.broadcast %478 : vector<16x1xi1> to vector<16x32xi1>
    %480 = arith.select %479, %475, %441 : vector<16x32xi1>, vector<16x32xf32>
    %481 = vector.shape_cast %477 : vector<16x1xi1> to vector<16x1xi1>
    %482 = vector.broadcast %481 : vector<16x1xi1> to vector<16x32xi1>
    %483 = arith.select %482, %473, %444 : vector<16x32xi1>, vector<16x32xf32>
    %c12_i32_84 = arith.constant 12 : i32
    %484 = vector.extract_strided_slice %480 {offsets = [0, 0], sizes = [8, 32], strides = [1, 1]} : vector<16x32xf32> to vector<8x32xf32>
    %485 = vector.extract_strided_slice %480 {offsets = [8, 0], sizes = [8, 32], strides = [1, 1]} : vector<16x32xf32> to vector<8x32xf32>
    %c0_85 = arith.constant 0 : index
    %c0_86 = arith.constant 0 : index
    %486 = vector.load %arg4[%c0_85, %c0_86] : memref<2x32xf32, #tpu.memory_space<vmem>>, vector<1x32xf32>
    %487 = vector.broadcast %486 : vector<1x32xf32> to vector<8x32xf32>
    %488 = arith.mulf %484, %487 : vector<8x32xf32>
    %c1 = arith.constant 1 : index
    %c0_87 = arith.constant 0 : index
    %489 = vector.load %arg4[%c1, %c0_87] : memref<2x32xf32, #tpu.memory_space<vmem>>, vector<1x32xf32>
    %490 = vector.broadcast %489 : vector<1x32xf32> to vector<8x32xf32>
    %491 = arith.mulf %485, %490 : vector<8x32xf32>
    %492 = arith.addf %488, %491 : vector<8x32xf32>
    %cst_88 = arith.constant dense<0.000000e+00> : vector<8xf32>
    %493 = vector.multi_reduction <add>, %492, %cst_88 [1] : vector<8x32xf32> to vector<8xf32>
    %494 = vector.shape_cast %493 : vector<8xf32> to vector<8x1xf32>
    %c0_89 = arith.constant 0 : index
    %c0_90 = arith.constant 0 : index
    %495 = vector.load %arg5[%c0_89, %c0_90] : memref<1x1xf32, #tpu.memory_space<vmem>>, vector<1x1xf32>
    %496 = vector.broadcast %495 : vector<1x1xf32> to vector<8x1xf32>
    %497 = arith.addf %494, %496 : vector<8x1xf32>
    %498 = arith.negf %497 : vector<8x1xf32>
    %499 = math.exp %498 : vector<8x1xf32>
    %cst_91 = arith.constant 1.000000e+00 : f32
    %500 = vector.broadcast %cst_91 : f32 to vector<8x1xf32>
    %501 = arith.addf %500, %499 : vector<8x1xf32>
    %502 = arith.divf %500, %501 : vector<8x1xf32>
    %c0_92 = arith.constant 0 : index
    %c0_93 = arith.constant 0 : index
    %503 = vector.load %arg6[%c0_92, %c0_93] : memref<8x1xf32, #tpu.memory_space<vmem>>, vector<8x1xf32>
    tpu.vector_store %arg6[%c0_92, %c0_93], %502 {strides = array<i32>} : memref<8x1xf32, #tpu.memory_space<vmem>>, vector<8x1xf32>,
    return
  }
}

</mosaic_0001>

<bundles_post_ra>
// kernel: tpu_custom_call.1
= control target key start
LH: loop header
LB: loop body
LE: loop exit
PB: predicated region body
PF: predicated region fallthrough
CT: control target
= control target key end

     0   :  { %vm68_vm0 = vcmask 523264   ;;  %v2856_v42 = vmov 0.0   ;;  %s2857_s18 = smov 64   ;;  %s2858_s19 = smov 32   ;;  %vm359_vm1 = vcmask 261120   ;;  %vm2166_vm2 = vcmask 7168   ;;  %s3279_s1 = inlined_call_operand.vmem [shape: f32[64,128], index: 1, kind: input, shape index: {}]   ;;  %s3280_s0 = inlined_call_operand.vmem [shape: f32[192,64], index: 0, kind: input, shape index: {}]   ;;  %s3281_s2 = inlined_call_operand.vmem [shape: f32[32,128], index: 2, kind: input, shape index: {}]   ;;  %s3282_s3 = inlined_call_operand.vmem [shape: f32[1,128], index: 3, kind: input, shape index: {}]   ;;  %s3283_s4 = inlined_call_operand.vmem [shape: f32[2,32], index: 4, kind: input, shape index: {}]   ;;  %s3284_s5 = inlined_call_operand.<no memory space> [shape: f32[1,1], index: 5, kind: input, shape index: {}]   ;;  %s3285_s6 = inlined_call_operand.vmem [shape: f32[8,1], index: 6, kind: output, shape index: {}]  }
   0x1   :  { %v25_v0 = vld [vmem:[%s3279_s1] sm:$0xff]  ;;  %v26_v1 = vld [vmem:[%s3279_s1 + $0x8] sm:$0xff]  ;;  %v27_v2 = vld [vmem:[%s3279_s1 + $0x10] sm:$0xff] }
   0x2   :  { %v2535_v3 = vpack.c.bf16 %v26_v1, %v25_v0  ;;  %v28_v4 = vld [vmem:[%s3279_s1 + $0x18] sm:$0xff]  ;;  %v29_v6 = vld [vmem:[%s3279_s1 + $0x20] sm:$0xff]  ;;  %v30_v7 = vld [vmem:[%s3279_s1 + $0x28] sm:$0xff] }
   0x3   :  { %v2539_v5 = vpack.c.bf16 %v28_v4, %v27_v2  ;;  %v38_v8 = vld [vmem:[%s3280_s0] sm:$0xff]  ;;  %v34_v10 = vld [vmem:[%s3281_s2 + $0x8] sm:$0xff]  ;;  %v2543_v12 = vpack.c.bf16 %v30_v7, %v29_v6  ;;  %v31_v13 = vld [vmem:[%s3279_s1 + $0x30] sm:$0xff] }
   0x4   :  { %2536 = vmatprep.subr.bf16.mxu1 %v2535_v3  ;;  %2367 = vmatprep.mubr.msk.f32.mxu1 %vm68_vm0, %v38_v8  ;;  %v33_v9 = vld [vmem:[%s3281_s2] sm:$0xff]  ;;  %v32_v14 = vld [vmem:[%s3279_s1 + $0x38] sm:$0xff]  ;;  %v35_v15 = vld [vmem:[%s3281_s2 + $0x10] sm:$0xff]  ;;  %s2859_s1 = smov 96  }
   0x5   :  { %2538 = vmatpush3.bf16.msra.mxu1 %v2535_v3  ;;  %v2923_v11 = vpack.c.bf16 %v34_v10, %v33_v9  ;;  %v36_v16 = vld [vmem:[%s3281_s2 + $0x18] sm:$0xff]  ;;  %v2547_v17 = vpack.c.bf16 %v32_v14, %v31_v13  ;;  %v39_v19 = vld [vmem:[%s3280_s0 + $0x8] sm:$0xff]  ;;  %v40_v20 = vld [vmem:[%s3280_s0 + $0x10] sm:$0xff] }
   0x6   :  { %2540 = vmatprep.subr.bf16.mxu1 %v2539_v5  ;;  %v2939_v18 = vpack.c.bf16 %v36_v16, %v35_v15  ;;  %v41_v21 = vld [vmem:[%s3280_s0 + $0x18] sm:$0xff]  ;;  %v42_v22 = vld [vmem:[%s3280_s0 + $0x20] sm:$0xff]  ;;  %v43_v23 = vld [vmem:[%s3280_s0 + $0x28] sm:$0xff] }
   0x7   :  { %2568 = vmatprep.subr.bf16.mxu0 %v2923_v11  ;;  %v44_v24 = vld [vmem:[%s3280_s0 + $0x30] sm:$0xff]  ;;  %v45_v25 = vld [vmem:[%s3280_s0 + $0x38] sm:$0xff]  ;;  %v46_v26 = vld [vmem:[%s3280_s0 + $0x40] sm:$0xff] }
   0x8   :  { %2570 = vmatpush3.bf16.msra.mxu0 %v2923_v11  ;;  %v47_v27 = vld [vmem:[%s3280_s0 + $0x48] sm:$0xff]  ;;  %v48_v28 = vld [vmem:[%s3280_s0 + $0x50] sm:$0xff]  ;;  %v49_v29 = vld [vmem:[%s3280_s0 + $0x58] sm:$0xff] }
   0x9   :  { %2542 = vmatpush3.bf16.msra.mxu1 %v2539_v5  ;;  %2572 = vmatprep.subr.bf16.mxu0 %v2939_v18  ;;  %v50_v30 = vld [vmem:[%s3280_s0 + $0x60] sm:$0xff]  ;;  %v51_v31 = vld [vmem:[%s3280_s0 + $0x68] sm:$0xff]  ;;  %v52_v32 = vld [vmem:[%s3280_s0 + $0x70] sm:$0xff] }
   0xa   :  { %2544 = vmatprep.subr.bf16.mxu1 %v2543_v12  ;;  %v53_v33 = vld [vmem:[%s3280_s0 + $0x78] sm:$0xff]  ;;  %v54_v34 = vld [vmem:[%s3280_s0 + $0x80] sm:$0xff]  ;;  %v55_v35 = vld [vmem:[%s3280_s0 + $0x88] sm:$0xff] }
   0xb   :  { %v56_v36 = vld [vmem:[%s3280_s0 + $0x90] sm:$0xff]  ;;  %v57_v37 = vld [vmem:[%s3280_s0 + $0x98] sm:$0xff]  ;;  %v58_v38 = vld [vmem:[%s3280_s0 + $0xa0] sm:$0xff] }
   0xc   :  { %2574 = vmatpush3.bf16.msra.mxu0 %v2939_v18  ;;  %v59_v39 = vld [vmem:[%s3280_s0 + $0xa8] sm:$0xff]  ;;  %v60_v40 = vld [vmem:[%s3280_s0 + $0xb0] sm:$0xff]  ;;  %v61_v41 = vld [vmem:[%s3280_s0 + $0xb8] sm:$0xff] }
   0xd   :  { %2546 = vmatpush3.bf16.msra.mxu1 %v2543_v12  ;;  %2576 = vmatprep.subr.bf16.mxu0 %v2923_v11  ;;  %v3079_v0 = vld [vmem:[%s3282_s3] ss:$0 sm:$0xff] }
   0xe   :  { %2548 = vmatprep.subr.bf16.mxu1 %v2547_v17 }
  0x11   :  { %2550 = vmatpush3.bf16.msra.mxu1 %v2547_v17 }
  0x12   :  { %2552 = vmatprep.subr.bf16.mxu1 %v2923_v11 }
  0x14   :  { %2368 = vmatmul.mubr.msk.f32.vlgmr.msra.gmra.mrb[0].mxu1 %vm68_vm0, %v39_v19 }
  0x15   :  { %2554 = vmatpush3.bf16.msra.mxu1 %v2923_v11  ;;  %2370 = vmatprep.mubr.msk.f32.mxu1 %vm68_vm0, %v40_v20 }
  0x16   :  { %2556 = vmatprep.subr.bf16.mxu1 %v2939_v18 }
  0x18   :  { %2371 = vmatmul.mubr.msk.f32.gmra.mrb[2].mxu1 %vm68_vm0, %v41_v21 }
  0x19   :  { %2373 = vmatprep.mubr.msk.f32.mxu1 %vm68_vm0, %v42_v22  ;;  %2558 = vmatpush3.bf16.msra.mxu1 %v2939_v18 }
  0x1a   :  { %2560 = vmatprep.subr.bf16.mxu1 %v2923_v11 }
  0x1c   :  { %2374 = vmatmul.mubr.msk.f32.gmra.mrb[4].mxu1 %vm68_vm0, %v43_v23 }
  0x1d   :  { %2376 = vmatprep.mubr.msk.f32.mxu1 %vm68_vm0, %v44_v24 }
  0x20   :  { %2377 = vmatmul.mubr.msk.f32.gmra.mrb[6].mxu1 %vm68_vm0, %v45_v25 }
  0x21   :  { %2379 = vmatprep.mubr.msk.f32.mxu1 %vm68_vm0, %v46_v26 }
  0x24   :  { %2380 = vmatmul.mubr.msk.f32.gmra.mrb[8].mxu1 %vm68_vm0, %v47_v27 }
  0x25   :  { %2382 = vmatprep.mubr.msk.f32.mxu1 %vm68_vm0, %v48_v28 }
  0x28   :  { %2383 = vmatmul.mubr.msk.f32.gmra.mrb[10].mxu1 %vm68_vm0, %v49_v29 }
  0x29   :  { %2385 = vmatprep.mubr.msk.f32.mxu1 %vm68_vm0, %v50_v30 }
  0x2c   :  { %2386 = vmatmul.mubr.msk.f32.gmra.mrb[12].mxu1 %vm68_vm0, %v51_v31 }
  0x2d   :  { %2388 = vmatprep.mubr.msk.f32.mxu1 %vm68_vm0, %v52_v32 }
  0x30   :  { %2389 = vmatmul.mubr.msk.f32.gmra.mrb[14].mxu1 %vm68_vm0, %v53_v33 }
  0x31   :  { %2391 = vmatprep.mubr.msk.f32.mxu1 %vm68_vm0, %v54_v34 }
  0x34   :  { %2392 = vmatmul.mubr.msk.f32.gmra.mrb[16].mxu1 %vm68_vm0, %v55_v35 }
  0x35   :  { %2394 = vmatprep.mubr.msk.f32.mxu1 %vm68_vm0, %v56_v36 }
  0x38   :  { %2395 = vmatmul.mubr.msk.f32.gmra.mrb[18].mxu1 %vm68_vm0, %v57_v37 }
  0x39   :  { %2397 = vmatprep.mubr.msk.f32.mxu1 %vm68_vm0, %v58_v38 }
  0x3c   :  { %2398 = vmatmul.mubr.msk.f32.gmra.mrb[20].mxu1 %vm68_vm0, %v59_v39 }
  0x3d   :  { %2400 = vmatprep.mubr.msk.f32.mxu1 %vm68_vm0, %v60_v40 }
  0x40   :  { %2401 = vmatmul.mubr.msk.f32.gmra.mrb[22].mxu1 %vm68_vm0, %v61_v41 }
  0x41   :  { %2411 = vmatprep.mubr.f32.mxu1 %v2856_v42 }
  0x44   :  { %2412 = vmatmul.mubr.f32.vlgmr.msra.gmra.mrb[0].mxu1 %v2856_v42 }
  0x45   :  { %2562 = vmatpush3.bf16.msra.mxu1 %v2923_v11 }
  0x46   :  { %2564 = vmatprep.subr.bf16.mxu1 %v2939_v18 }
  0x49   :  { %2566 = vmatpush3.bf16.msra.mxu1 %v2939_v18 }
  0xef   :  { %v3044_v43 = vpop.f32.mrb[4].mxu1 }
  0xf0   :  { %v3046_v44 = vpop.f32.mrb[5].mxu1 }
  0xf3   :  { %v3048_v45 = vpop.f32.mrb[6].mxu1 }
  0xf4   :  { %v3050_v46 = vpop.f32.mrb[7].mxu1 }
  0xf7   :  { %v3052_v47 = vpop.f32.mrb[8].mxu1 }
  0xf8   :  { %v3054_v48 = vpop.f32.mrb[9].mxu1 }
  0xfb   :  { %v3056_v49 = vpop.f32.mrb[10].mxu1 }
  0xfc   :  { %v3058_v50 = vpop.f32.mrb[11].mxu1 }
  0xff   :  { %v3060_v51 = vpop.f32.mrb[12].mxu1 }
 0x100   :  { %v3062_v52 = vpop.f32.mrb[13].mxu1 }
 0x103   :  { %v3064_v53 = vpop.f32.mrb[14].mxu1 }
 0x104   :  { %v3066_v54 = vpop.f32.mrb[15].mxu1 }
 0x107   :  { %v3068_v55 = vpop.f32.mrb[16].mxu1 }
 0x108   :  { %v287_v56 = vpop.f32.mrb[17].mxu1 }
 0x10b   :  { %v3070_v57 = vpop.f32.mrb[18].mxu1 }
 0x10c   :  { %v297_v58 = vpop.f32.mrb[19].mxu1 }
 0x10f   :  { %v3072_v59 = vpop.f32.mrb[20].mxu1 }
 0x110   :  { %v307_v60 = vpop.f32.mrb[21].mxu1 }
 0x113   :  { %v3074_v61 = vpop.f32.mrb[22].mxu1 }
 0x114   :  { %v317_v62 = vpop.f32.mrb[23].mxu1 }
 0x117   :  { %v2413_v63 = vpop.f32.mrb[0].mxu1 }
 0x118   :  { %v429_v1 = vpop.f32.mrb[1].mxu1  ;;  %v2647_v3 = vadd.f32 %v2413_v63, %v3079_v0 }
 0x119   :  { %v2648_v2 = vadd.f32 %v3079_v0, %v429_v1 }
 0x11a   :  { %v2198_v7 = vmul.f32 -1.442695, %v2647_v3 }
 0x11b   :  { %2691 = vtanh.f32 %v2648_v2  ;;  %v2197_v6 = vmul.f32 -1.442695, %v2648_v2 }
 0x11c   :  { %2693 = vtanh.f32 %v2647_v3 }
 0x11d   :  { %2695 = vpow2.f32 %v2197_v6 }
 0x11e   :  { %2697 = vpow2.f32 %v2198_v7 }
 0x125   :  { %v2692_v4 = vpop.eup %2691 }
 0x126   :  { %458 = vrot.lane.b32.xlu0 %v2692_v4, %s2857_s18  ;;  %v2694_v5 = vpop.eup %2693 }
 0x127   :  { %v2696_v8 = vpop.eup %2695 }
 0x128   :  { %v446_v9 = vadd.f32 1.0, %v2696_v8  ;;  %v2698_v10 = vpop.eup %2697 }
 0x129   :  { %v447_v12 = vadd.f32 1.0, %v2698_v10 }
 0x12a   :  { %460 = vrot.lane.b32.xlu0 %v2694_v5, %s2857_s18  ;;  %2699 = vrcp.f32 %v446_v9 }
 0x12b   :  { %2701 = vrcp.f32 %v447_v12 }
 0x134   :  { %v2700_v13 = vpop.eup %2699 }
 0x135   :  { %v2702_v16 = vpop.eup %2701  ;;  %v454_v20 = vmul.f32 0.0, %v2700_v13 }
 0x136   :  { %v455_v23 = vmul.f32 0.0, %v2702_v16 }
 0x198   :  { %v459_v14 = vpop.permute.xlu0 %458 }
 0x199   :  { %v464_v15 = vmul.f32 %v2700_v13, %v459_v14 }
 0x19b   :  { %468 = vrot.lane.b32.xlu1 %v464_v15, %s2858_s19 }
 0x19c   :  { %v461_v17 = vpop.permute.xlu0 %460 }
 0x19d   :  { %v465_v19 = vmul.f32 %v2702_v16, %v461_v17 }
 0x19f   :  { %470 = vrot.lane.b32.xlu1 %v465_v19, %s2858_s19 }
 0x20d   :  { %v469_v21 = vpop.permute.xlu1 %468 }
 0x20e   :  { %v474_v22 = vadd.f32 %v469_v21, %v454_v20  ;;  %v233_v21 = vadd.f32 %v3044_v43, %v3079_v0 }
 0x210   :  { %2703 = vtanh.f32 %v474_v22 }
 0x211   :  { %v471_v24 = vpop.permute.xlu1 %470 }
 0x212   :  { %v475_v25 = vadd.f32 %v471_v24, %v455_v23 }
 0x214   :  { %2705 = vtanh.f32 %v475_v25 }
 0x21a   :  { %v2704_v26 = vpop.eup %2703 }
 0x21b   :  { %480 = vrot.lane.b32.xlu0 %v2704_v26, %s2857_s18 }
 0x21e   :  { %v2706_v27 = vpop.eup %2705 }
 0x21f   :  { %482 = vrot.lane.b32.xlu1 %v2706_v27, %s2857_s18 }
 0x28d   :  { %v481_v28 = vpop.permute.xlu0 %480 }
 0x28e   :  { %v486_v29 = vmul.f32 %v2700_v13, %v481_v28 }
 0x290   :  { %503 = vrot.lane.b32.xlu0 %v486_v29, %s2858_s19 }
 0x291   :  { %v483_v30 = vpop.permute.xlu1 %482 }
 0x292   :  { %v487_v31 = vmul.f32 %v2702_v16, %v483_v30 }
 0x294   :  { %505 = vrot.lane.b32.xlu1 %v487_v31, %s2858_s19 }
 0x302   :  { %v504_v32 = vpop.permute.xlu0 %503 }
 0x303   :  { %2422 = vmatprep.mubr.msk.f32.mxu1 %vm359_vm1, %v504_v32 }
 0x306   :  { %v506_v33 = vpop.permute.xlu1 %505 }
 0x307   :  { %2423 = vmatmul.mubr.msk.f32.vlgmr.msra.gmra.mrb[2].mxu1 %vm359_vm1, %v506_v33 }
 0x3da   :  { %v2424_v34 = vpop.f32.mrb[2].mxu1 }
 0x3db   :  { %v2649_v35 = vadd.f32 %v2424_v34, %v3079_v0  ;;  %v577_v36 = vpop.f32.mrb[3].mxu1 }
 0x3dc   :  { %v2650_v37 = vadd.f32 %v3079_v0, %v577_v36 }
 0x3dd   :  { %2707 = vtanh.f32 %v2649_v35  ;;  %v2202_v40 = vmul.f32 -1.442695, %v2649_v35 }
 0x3de   :  { %2709 = vtanh.f32 %v2650_v37  ;;  %v2201_v41 = vmul.f32 -1.442695, %v2650_v37 }
 0x3df   :  { %2711 = vpow2.f32 %v2202_v40 }
 0x3e0   :  { %2713 = vpow2.f32 %v2201_v41 }
 0x3e7   :  { %v2708_v38 = vpop.eup %2707 }
 0x3e8   :  { %v2710_v39 = vpop.eup %2709  ;;  %608 = vrot.lane.b32.xlu1 %v2708_v38, %s2857_s18 }
 0x3e9   :  { %606 = vrot.lane.b32.xlu0 %v2710_v39, %s2857_s18  ;;  %v2712_v42 = vpop.eup %2711 }
 0x3ea   :  { %v2714_v56 = vpop.eup %2713  ;;  %v595_v58 = vadd.f32 1.0, %v2712_v42 }
 0x3eb   :  { %v594_v60 = vadd.f32 1.0, %v2714_v56 }
 0x3ec   :  { %2715 = vrcp.f32 %v595_v58 }
 0x3ed   :  { %2717 = vrcp.f32 %v594_v60 }
 0x3f6   :  { %v2716_v62 = vpop.eup %2715 }
 0x3f7   :  { %v2718_v1 = vpop.eup %2717  ;;  %v603_v5 = vmul.f32 %v2716_v62, %v475_v25 }
 0x3f8   :  { %v602_v7 = vmul.f32 %v2718_v1, %v474_v22  ;;  %v228_v22 = vadd.f32 %v3079_v0, %v3046_v44 }
 0x45a   :  { %v609_v63 = vpop.permute.xlu1 %608 }
 0x45b   :  { %v613_v2 = vmul.f32 %v2716_v62, %v609_v63  ;;  %v607_v3 = vpop.permute.xlu0 %606 }
 0x45c   :  { %v612_v4 = vmul.f32 %v2718_v1, %v607_v3 }
 0x45d   :  { %618 = vrot.lane.b32.xlu1 %v613_v2, %s2858_s19 }
 0x45e   :  { %616 = vrot.lane.b32.xlu0 %v612_v4, %s2858_s19 }
 0x4cf   :  { %v619_v6 = vpop.permute.xlu1 %618 }
 0x4d0   :  { %v623_v8 = vadd.f32 %v619_v6, %v603_v5  ;;  %v617_v9 = vpop.permute.xlu0 %616  ;;  %v243_v6 = vadd.f32 %v3048_v45, %v3079_v0 }
 0x4d1   :  { %v622_v10 = vadd.f32 %v617_v9, %v602_v7  ;;  %v238_v7 = vadd.f32 %v3079_v0, %v3050_v46 }
 0x4d2   :  { %2719 = vtanh.f32 %v623_v8 }
 0x4d3   :  { %2721 = vtanh.f32 %v622_v10 }
 0x4dc   :  { %v2720_v12 = vpop.eup %2719 }
 0x4dd   :  { %v2722_v13 = vpop.eup %2721  ;;  %630 = vrot.lane.b32.xlu1 %v2720_v12, %s2857_s18 }
 0x4de   :  { %628 = vrot.lane.b32.xlu0 %v2722_v13, %s2857_s18 }
 0x54f   :  { %v631_v14 = vpop.permute.xlu1 %630 }
 0x550   :  { %v635_v15 = vmul.f32 %v2716_v62, %v631_v14  ;;  %v629_v16 = vpop.permute.xlu0 %628 }
 0x551   :  { %v634_v17 = vmul.f32 %v2718_v1, %v629_v16 }
 0x552   :  { %653 = vrot.lane.b32.xlu1 %v635_v15, %s2858_s19 }
 0x553   :  { %651 = vrot.lane.b32.xlu0 %v634_v17, %s2858_s19 }
 0x5c4   :  { %v654_v20 = vpop.permute.xlu1 %653 }
 0x5c5   :  { %v652_v19 = vpop.permute.xlu0 %651 }
 0x5c6   :  { %2433 = vmatprep.mubr.msk.f32.mxu0 %vm359_vm1, %v652_v19 }
 0x5c7   :  { %2434 = vmatmul.mubr.msk.f32.vlgmr.msra.gmra.mrb[0].mxu0 %vm359_vm1, %v654_v20 }
 0x5c8   :  { %2578 = vmatpush3.bf16.msra.mxu0 %v2923_v11 }
 0x5c9   :  { %2580 = vmatprep.subr.bf16.mxu0 %v2939_v18 }
 0x5cc   :  { %2582 = vmatpush3.bf16.msra.mxu0 %v2939_v18 }
 0x5cd   :  { %2584 = vmatprep.subr.bf16.mxu0 %v2923_v11 }
 0x69a   :  { %v2435_v23 = vpop.f32.mrb[0].mxu0 }
 0x69b   :  { %v735_v24 = vadd.f32 %v2435_v23, %v233_v21  ;;  %v725_v25 = vpop.f32.mrb[1].mxu0 }
 0x69c   :  { %v734_v26 = vadd.f32 %v725_v25, %v228_v22 }
 0x69d   :  { %2723 = vtanh.f32 %v735_v24  ;;  %v2206_v29 = vmul.f32 -1.442695, %v735_v24 }
 0x69e   :  { %2725 = vtanh.f32 %v734_v26  ;;  %v2205_v30 = vmul.f32 -1.442695, %v734_v26 }
 0x69f   :  { %2727 = vpow2.f32 %v2206_v29 }
 0x6a0   :  { %2729 = vpow2.f32 %v2205_v30 }
 0x6a7   :  { %v2724_v27 = vpop.eup %2723 }
 0x6a8   :  { %v2726_v28 = vpop.eup %2725  ;;  %756 = vrot.lane.b32.xlu1 %v2724_v27, %s2857_s18 }
 0x6a9   :  { %754 = vrot.lane.b32.xlu0 %v2726_v28, %s2857_s18  ;;  %v2728_v43 = vpop.eup %2727 }
 0x6aa   :  { %v2730_v31 = vpop.eup %2729  ;;  %v743_v32 = vadd.f32 1.0, %v2728_v43 }
 0x6ab   :  { %v742_v44 = vadd.f32 1.0, %v2730_v31 }
 0x6ac   :  { %2731 = vrcp.f32 %v743_v32 }
 0x6ad   :  { %2733 = vrcp.f32 %v742_v44 }
 0x6b6   :  { %v2732_v33 = vpop.eup %2731 }
 0x6b7   :  { %v2734_v35 = vpop.eup %2733  ;;  %v751_v39 = vmul.f32 %v2732_v33, %v623_v8 }
 0x6b8   :  { %v750_v41 = vmul.f32 %v2734_v35, %v622_v10 }
 0x71a   :  { %v757_v34 = vpop.permute.xlu1 %756 }
 0x71b   :  { %v761_v36 = vmul.f32 %v2732_v33, %v757_v34  ;;  %v755_v37 = vpop.permute.xlu0 %754 }
 0x71c   :  { %v760_v38 = vmul.f32 %v2734_v35, %v755_v37 }
 0x71d   :  { %766 = vrot.lane.b32.xlu1 %v761_v36, %s2858_s19 }
 0x71e   :  { %764 = vrot.lane.b32.xlu0 %v760_v38, %s2858_s19  ;;  %v253_v38 = vadd.f32 %v3052_v47, %v3079_v0 }
 0x78f   :  { %v767_v40 = vpop.permute.xlu1 %766 }
 0x790   :  { %v771_v42 = vadd.f32 %v767_v40, %v751_v39  ;;  %v765_v56 = vpop.permute.xlu0 %764  ;;  %v248_v39 = vadd.f32 %v3079_v0, %v3054_v48 }
 0x791   :  { %v770_v58 = vadd.f32 %v765_v56, %v750_v41 }
 0x792   :  { %2735 = vtanh.f32 %v771_v42 }
 0x793   :  { %2737 = vtanh.f32 %v770_v58 }
 0x79c   :  { %v2736_v60 = vpop.eup %2735 }
 0x79d   :  { %v2738_v62 = vpop.eup %2737  ;;  %778 = vrot.lane.b32.xlu1 %v2736_v60, %s2857_s18 }
 0x79e   :  { %776 = vrot.lane.b32.xlu0 %v2738_v62, %s2857_s18 }
 0x80f   :  { %v779_v63 = vpop.permute.xlu1 %778 }
 0x810   :  { %v783_v1 = vmul.f32 %v2732_v33, %v779_v63  ;;  %v777_v2 = vpop.permute.xlu0 %776 }
 0x811   :  { %v782_v3 = vmul.f32 %v2734_v35, %v777_v2 }
 0x812   :  { %801 = vrot.lane.b32.xlu1 %v783_v1, %s2858_s19 }
 0x813   :  { %799 = vrot.lane.b32.xlu0 %v782_v3, %s2858_s19 }
 0x884   :  { %v802_v5 = vpop.permute.xlu1 %801 }
 0x885   :  { %v800_v4 = vpop.permute.xlu0 %799 }
 0x886   :  { %2444 = vmatprep.mubr.msk.f32.mxu0 %vm359_vm1, %v800_v4 }
 0x887   :  { %2445 = vmatmul.mubr.msk.f32.vlgmr.msra.gmra.mrb[2].mxu0 %vm359_vm1, %v802_v5 }
 0x888   :  { %2586 = vmatpush3.bf16.msra.mxu0 %v2923_v11 }
 0x889   :  { %2588 = vmatprep.subr.bf16.mxu0 %v2939_v18 }
 0x88c   :  { %2590 = vmatpush3.bf16.msra.mxu0 %v2939_v18 }
 0x88d   :  { %2592 = vmatprep.subr.bf16.mxu0 %v2923_v11 }
 0x95a   :  { %v2446_v8 = vpop.f32.mrb[2].mxu0 }
 0x95b   :  { %v883_v9 = vadd.f32 %v2446_v8, %v243_v6  ;;  %v873_v10 = vpop.f32.mrb[3].mxu0 }
 0x95c   :  { %v882_v12 = vadd.f32 %v873_v10, %v238_v7 }
 0x95d   :  { %2739 = vtanh.f32 %v883_v9  ;;  %v2210_v15 = vmul.f32 -1.442695, %v883_v9 }
 0x95e   :  { %2741 = vtanh.f32 %v882_v12  ;;  %v2209_v16 = vmul.f32 -1.442695, %v882_v12 }
 0x95f   :  { %2743 = vpow2.f32 %v2210_v15 }
 0x960   :  { %2745 = vpow2.f32 %v2209_v16 }
 0x967   :  { %v2740_v13 = vpop.eup %2739 }
 0x968   :  { %v2742_v14 = vpop.eup %2741  ;;  %904 = vrot.lane.b32.xlu1 %v2740_v13, %s2857_s18 }
 0x969   :  { %902 = vrot.lane.b32.xlu0 %v2742_v14, %s2857_s18  ;;  %v2744_v45 = vpop.eup %2743 }
 0x96a   :  { %v2746_v17 = vpop.eup %2745  ;;  %v891_v19 = vadd.f32 1.0, %v2744_v45 }
 0x96b   :  { %v890_v46 = vadd.f32 1.0, %v2746_v17 }
 0x96c   :  { %2747 = vrcp.f32 %v891_v19 }
 0x96d   :  { %2749 = vrcp.f32 %v890_v46 }
 0x976   :  { %v2748_v20 = vpop.eup %2747 }
 0x977   :  { %v2750_v22 = vpop.eup %2749  ;;  %v899_v26 = vmul.f32 %v2748_v20, %v771_v42 }
 0x978   :  { %v898_v28 = vmul.f32 %v2750_v22, %v770_v58 }
 0x9da   :  { %v905_v21 = vpop.permute.xlu1 %904 }
 0x9db   :  { %v909_v23 = vmul.f32 %v2748_v20, %v905_v21  ;;  %v903_v24 = vpop.permute.xlu0 %902 }
 0x9dc   :  { %v908_v25 = vmul.f32 %v2750_v22, %v903_v24  ;;  %v258_v24 = vadd.f32 %v3079_v0, %v3058_v50 }
 0x9dd   :  { %914 = vrot.lane.b32.xlu1 %v909_v23, %s2858_s19  ;;  %v263_v23 = vadd.f32 %v3056_v49, %v3079_v0 }
 0x9de   :  { %912 = vrot.lane.b32.xlu0 %v908_v25, %s2858_s19 }
 0xa4f   :  { %v915_v27 = vpop.permute.xlu1 %914 }
 0xa50   :  { %v919_v29 = vadd.f32 %v915_v27, %v899_v26  ;;  %v913_v30 = vpop.permute.xlu0 %912 }
 0xa51   :  { %v918_v43 = vadd.f32 %v913_v30, %v898_v28 }
 0xa52   :  { %2751 = vtanh.f32 %v919_v29 }
 0xa53   :  { %2753 = vtanh.f32 %v918_v43 }
 0xa5c   :  { %v2752_v31 = vpop.eup %2751 }
 0xa5d   :  { %v2754_v32 = vpop.eup %2753  ;;  %926 = vrot.lane.b32.xlu1 %v2752_v31, %s2857_s18 }
 0xa5e   :  { %924 = vrot.lane.b32.xlu0 %v2754_v32, %s2857_s18 }
 0xacf   :  { %v927_v44 = vpop.permute.xlu1 %926 }
 0xad0   :  { %v931_v33 = vmul.f32 %v2748_v20, %v927_v44  ;;  %v925_v34 = vpop.permute.xlu0 %924 }
 0xad1   :  { %v930_v35 = vmul.f32 %v2750_v22, %v925_v34 }
 0xad2   :  { %949 = vrot.lane.b32.xlu1 %v931_v33, %s2858_s19 }
 0xad3   :  { %947 = vrot.lane.b32.xlu0 %v930_v35, %s2858_s19 }
 0xb44   :  { %v950_v37 = vpop.permute.xlu1 %949 }
 0xb45   :  { %v948_v36 = vpop.permute.xlu0 %947 }
 0xb46   :  { %2455 = vmatprep.mubr.msk.f32.mxu0 %vm359_vm1, %v948_v36 }
 0xb47   :  { %2456 = vmatmul.mubr.msk.f32.vlgmr.msra.gmra.mrb[4].mxu0 %vm359_vm1, %v950_v37 }
 0xb48   :  { %2594 = vmatpush3.bf16.msra.mxu0 %v2923_v11 }
 0xb49   :  { %2596 = vmatprep.subr.bf16.mxu0 %v2939_v18 }
 0xb4c   :  { %2598 = vmatpush3.bf16.msra.mxu0 %v2939_v18 }
 0xb4d   :  { %2600 = vmatprep.subr.bf16.mxu0 %v2923_v11 }
 0xc1a   :  { %v2457_v40 = vpop.f32.mrb[4].mxu0 }
 0xc1b   :  { %v1031_v41 = vadd.f32 %v2457_v40, %v253_v38  ;;  %v1021_v42 = vpop.f32.mrb[5].mxu0 }
 0xc1c   :  { %v1030_v56 = vadd.f32 %v1021_v42, %v248_v39 }
 0xc1d   :  { %2755 = vtanh.f32 %v1031_v41  ;;  %v2214_v62 = vmul.f32 -1.442695, %v1031_v41 }
 0xc1e   :  { %2757 = vtanh.f32 %v1030_v56  ;;  %v2213_v63 = vmul.f32 -1.442695, %v1030_v56 }
 0xc1f   :  { %2759 = vpow2.f32 %v2214_v62 }
 0xc20   :  { %2761 = vpow2.f32 %v2213_v63 }
 0xc27   :  { %v2756_v58 = vpop.eup %2755 }
 0xc28   :  { %v2758_v60 = vpop.eup %2757  ;;  %1052 = vrot.lane.b32.xlu1 %v2756_v58, %s2857_s18 }
 0xc29   :  { %1050 = vrot.lane.b32.xlu0 %v2758_v60, %s2857_s18  ;;  %v2760_v47 = vpop.eup %2759 }
 0xc2a   :  { %v2762_v1 = vpop.eup %2761  ;;  %v1039_v2 = vadd.f32 1.0, %v2760_v47 }
 0xc2b   :  { %v1038_v48 = vadd.f32 1.0, %v2762_v1 }
 0xc2c   :  { %2763 = vrcp.f32 %v1039_v2 }
 0xc2d   :  { %2765 = vrcp.f32 %v1038_v48 }
 0xc36   :  { %v2764_v3 = vpop.eup %2763 }
 0xc37   :  { %v2766_v5 = vpop.eup %2765  ;;  %v1047_v9 = vmul.f32 %v2764_v3, %v919_v29 }
 0xc38   :  { %v1046_v12 = vmul.f32 %v2766_v5, %v918_v43 }
 0xc9a   :  { %v1053_v4 = vpop.permute.xlu1 %1052 }
 0xc9b   :  { %v1057_v6 = vmul.f32 %v2764_v3, %v1053_v4  ;;  %v1051_v7 = vpop.permute.xlu0 %1050  ;;  %v273_v4 = vadd.f32 %v3060_v51, %v3079_v0 }
 0xc9c   :  { %v1056_v8 = vmul.f32 %v2766_v5, %v1051_v7 }
 0xc9d   :  { %1062 = vrot.lane.b32.xlu1 %v1057_v6, %s2858_s19 }
 0xc9e   :  { %1060 = vrot.lane.b32.xlu0 %v1056_v8, %s2858_s19 }
 0xd0f   :  { %v1063_v10 = vpop.permute.xlu1 %1062 }
 0xd10   :  { %v1067_v13 = vadd.f32 %v1063_v10, %v1047_v9  ;;  %v1061_v14 = vpop.permute.xlu0 %1060 }
 0xd11   :  { %v1066_v15 = vadd.f32 %v1061_v14, %v1046_v12 }
 0xd12   :  { %2767 = vtanh.f32 %v1067_v13 }
 0xd13   :  { %2769 = vtanh.f32 %v1066_v15 }
 0xd1c   :  { %v2768_v16 = vpop.eup %2767 }
 0xd1d   :  { %v2770_v45 = vpop.eup %2769  ;;  %1074 = vrot.lane.b32.xlu1 %v2768_v16, %s2857_s18 }
 0xd1e   :  { %1072 = vrot.lane.b32.xlu0 %v2770_v45, %s2857_s18 }
 0xd8f   :  { %v1075_v17 = vpop.permute.xlu1 %1074 }
 0xd90   :  { %v1079_v19 = vmul.f32 %v2764_v3, %v1075_v17  ;;  %v1073_v46 = vpop.permute.xlu0 %1072 }
 0xd91   :  { %v1078_v20 = vmul.f32 %v2766_v5, %v1073_v46  ;;  %v268_v5 = vadd.f32 %v3079_v0, %v3062_v52 }
 0xd92   :  { %1097 = vrot.lane.b32.xlu1 %v1079_v19, %s2858_s19 }
 0xd93   :  { %1095 = vrot.lane.b32.xlu0 %v1078_v20, %s2858_s19 }
 0xe04   :  { %v1098_v22 = vpop.permute.xlu1 %1097 }
 0xe05   :  { %v1096_v21 = vpop.permute.xlu0 %1095 }
 0xe06   :  { %2466 = vmatprep.mubr.msk.f32.mxu0 %vm359_vm1, %v1096_v21 }
 0xe07   :  { %2467 = vmatmul.mubr.msk.f32.vlgmr.msra.gmra.mrb[6].mxu0 %vm359_vm1, %v1098_v22 }
 0xe08   :  { %2602 = vmatpush3.bf16.msra.mxu0 %v2923_v11 }
 0xe09   :  { %2604 = vmatprep.subr.bf16.mxu0 %v2939_v18 }
 0xe0c   :  { %2606 = vmatpush3.bf16.msra.mxu0 %v2939_v18 }
 0xe0d   :  { %2608 = vmatprep.subr.bf16.mxu0 %v2923_v11 }
 0xeda   :  { %v2468_v25 = vpop.f32.mrb[6].mxu0 }
 0xedb   :  { %v1179_v26 = vadd.f32 %v2468_v25, %v263_v23  ;;  %v1169_v27 = vpop.f32.mrb[7].mxu0 }
 0xedc   :  { %v1178_v28 = vadd.f32 %v1169_v27, %v258_v24 }
 0xedd   :  { %2771 = vtanh.f32 %v1179_v26  ;;  %v2218_v43 = vmul.f32 -1.442695, %v1179_v26 }
 0xede   :  { %2773 = vtanh.f32 %v1178_v28  ;;  %v2217_v31 = vmul.f32 -1.442695, %v1178_v28 }
 0xedf   :  { %2775 = vpow2.f32 %v2218_v43 }
 0xee0   :  { %2777 = vpow2.f32 %v2217_v31 }
 0xee7   :  { %v2772_v29 = vpop.eup %2771 }
 0xee8   :  { %v2774_v30 = vpop.eup %2773  ;;  %1200 = vrot.lane.b32.xlu1 %v2772_v29, %s2857_s18 }
 0xee9   :  { %1198 = vrot.lane.b32.xlu0 %v2774_v30, %s2857_s18  ;;  %v2776_v49 = vpop.eup %2775 }
 0xeea   :  { %v2778_v32 = vpop.eup %2777  ;;  %v1187_v44 = vadd.f32 1.0, %v2776_v49 }
 0xeeb   :  { %v1186_v50 = vadd.f32 1.0, %v2778_v32 }
 0xeec   :  { %2779 = vrcp.f32 %v1187_v44 }
 0xeed   :  { %2781 = vrcp.f32 %v1186_v50  ;;  %v283_v50 = vadd.f32 %v3064_v53, %v3079_v0 }
 0xef6   :  { %v2780_v33 = vpop.eup %2779 }
 0xef7   :  { %v2782_v35 = vpop.eup %2781  ;;  %v1195_v39 = vmul.f32 %v2780_v33, %v1067_v13 }
 0xef8   :  { %v1194_v41 = vmul.f32 %v2782_v35, %v1066_v15 }
 0xf5a   :  { %v1201_v34 = vpop.permute.xlu1 %1200 }
 0xf5b   :  { %v1205_v36 = vmul.f32 %v2780_v33, %v1201_v34  ;;  %v1199_v37 = vpop.permute.xlu0 %1198 }
 0xf5c   :  { %v1204_v38 = vmul.f32 %v2782_v35, %v1199_v37 }
 0xf5d   :  { %1210 = vrot.lane.b32.xlu1 %v1205_v36, %s2858_s19 }
 0xf5e   :  { %1208 = vrot.lane.b32.xlu0 %v1204_v38, %s2858_s19 }
 0xfcf   :  { %v1211_v40 = vpop.permute.xlu1 %1210 }
 0xfd0   :  { %v1215_v42 = vadd.f32 %v1211_v40, %v1195_v39  ;;  %v1209_v56 = vpop.permute.xlu0 %1208 }
 0xfd1   :  { %v1214_v58 = vadd.f32 %v1209_v56, %v1194_v41 }
 0xfd2   :  { %2783 = vtanh.f32 %v1215_v42 }
 0xfd3   :  { %2785 = vtanh.f32 %v1214_v58 }
 0xfdc   :  { %v2784_v60 = vpop.eup %2783 }
 0xfdd   :  { %v2786_v62 = vpop.eup %2785  ;;  %1222 = vrot.lane.b32.xlu1 %v2784_v60, %s2857_s18 }
 0xfde   :  { %1220 = vrot.lane.b32.xlu0 %v2786_v62, %s2857_s18 }
0x104f   :  { %v1223_v63 = vpop.permute.xlu1 %1222 }
0x1050   :  { %v1227_v47 = vmul.f32 %v2780_v33, %v1223_v63  ;;  %v1221_v1 = vpop.permute.xlu0 %1220  ;;  %v278_v33 = vadd.f32 %v3079_v0, %v3066_v54 }
0x1051   :  { %v1226_v2 = vmul.f32 %v2782_v35, %v1221_v1 }
0x1052   :  { %1245 = vrot.lane.b32.xlu1 %v1227_v47, %s2858_s19 }
0x1053   :  { %1243 = vrot.lane.b32.xlu0 %v1226_v2, %s2858_s19 }
0x10c4   :  { %v1246_v3 = vpop.permute.xlu1 %1245 }
0x10c5   :  { %v1244_v48 = vpop.permute.xlu0 %1243 }
0x10c6   :  { %2477 = vmatprep.mubr.msk.f32.mxu0 %vm359_vm1, %v1244_v48 }
0x10c7   :  { %2478 = vmatmul.mubr.msk.f32.vlgmr.msra.gmra.mrb[8].mxu0 %vm359_vm1, %v1246_v3 }
0x10c8   :  { %2610 = vmatpush3.bf16.msra.mxu0 %v2923_v11 }
0x10c9   :  { %2612 = vmatprep.subr.bf16.mxu0 %v2939_v18 }
0x10cc   :  { %2614 = vmatpush3.bf16.msra.mxu0 %v2939_v18 }
0x10cd   :  { %2616 = vmatprep.subr.bf16.mxu0 %v2923_v11 }
0x119a   :  { %v2479_v6 = vpop.f32.mrb[8].mxu0 }
0x119b   :  { %v1327_v7 = vadd.f32 %v2479_v6, %v273_v4  ;;  %v1317_v8 = vpop.f32.mrb[9].mxu0 }
0x119c   :  { %v1326_v9 = vadd.f32 %v1317_v8, %v268_v5 }
0x119d   :  { %2787 = vtanh.f32 %v1327_v7  ;;  %v2222_v13 = vmul.f32 -1.442695, %v1327_v7 }
0x119e   :  { %2789 = vtanh.f32 %v1326_v9  ;;  %v2221_v14 = vmul.f32 -1.442695, %v1326_v9 }
0x119f   :  { %2791 = vpow2.f32 %v2222_v13 }
0x11a0   :  { %2793 = vpow2.f32 %v2221_v14 }
0x11a7   :  { %v2788_v10 = vpop.eup %2787 }
0x11a8   :  { %v2790_v12 = vpop.eup %2789  ;;  %1348 = vrot.lane.b32.xlu1 %v2788_v10, %s2857_s18 }
0x11a9   :  { %1346 = vrot.lane.b32.xlu0 %v2790_v12, %s2857_s18  ;;  %v2792_v51 = vpop.eup %2791 }
0x11aa   :  { %v2794_v15 = vpop.eup %2793  ;;  %v1335_v16 = vadd.f32 1.0, %v2792_v51 }
0x11ab   :  { %v1334_v52 = vadd.f32 1.0, %v2794_v15  ;;  %v293_v15 = vadd.f32 %v3068_v55, %v3079_v0 }
0x11ac   :  { %2795 = vrcp.f32 %v1335_v16 }
0x11ad   :  { %2797 = vrcp.f32 %v1334_v52 }
0x11b6   :  { %v2796_v45 = vpop.eup %2795 }
0x11b7   :  { %v2798_v19 = vpop.eup %2797  ;;  %v1343_v22 = vmul.f32 %v2796_v45, %v1215_v42 }
0x11b8   :  { %v1342_v24 = vmul.f32 %v2798_v19, %v1214_v58 }
0x121a   :  { %v1349_v17 = vpop.permute.xlu1 %1348 }
0x121b   :  { %v1353_v46 = vmul.f32 %v2796_v45, %v1349_v17  ;;  %v1347_v20 = vpop.permute.xlu0 %1346 }
0x121c   :  { %v1352_v21 = vmul.f32 %v2798_v19, %v1347_v20 }
0x121d   :  { %1358 = vrot.lane.b32.xlu1 %v1353_v46, %s2858_s19 }
0x121e   :  { %1356 = vrot.lane.b32.xlu0 %v1352_v21, %s2858_s19 }
0x128f   :  { %v1359_v23 = vpop.permute.xlu1 %1358 }
0x1290   :  { %v1363_v25 = vadd.f32 %v1359_v23, %v1343_v22  ;;  %v1357_v26 = vpop.permute.xlu0 %1356 }
0x1291   :  { %v1362_v27 = vadd.f32 %v1357_v26, %v1342_v24 }
0x1292   :  { %2799 = vtanh.f32 %v1363_v25 }
0x1293   :  { %2801 = vtanh.f32 %v1362_v27 }
0x129c   :  { %v2800_v28 = vpop.eup %2799 }
0x129d   :  { %v2802_v29 = vpop.eup %2801  ;;  %1370 = vrot.lane.b32.xlu1 %v2800_v28, %s2857_s18 }
0x129e   :  { %1368 = vrot.lane.b32.xlu0 %v2802_v29, %s2857_s18 }
0x130f   :  { %v1371_v30 = vpop.permute.xlu1 %1370 }
0x1310   :  { %v1375_v43 = vmul.f32 %v2796_v45, %v1371_v30  ;;  %v1369_v31 = vpop.permute.xlu0 %1368 }
0x1311   :  { %v1374_v49 = vmul.f32 %v2798_v19, %v1369_v31 }
0x1312   :  { %1393 = vrot.lane.b32.xlu1 %v1375_v43, %s2858_s19  ;;  %v303_v43 = vadd.f32 %v3070_v57, %v3079_v0 }
0x1313   :  { %1391 = vrot.lane.b32.xlu0 %v1374_v49, %s2858_s19 }
0x1384   :  { %v1394_v44 = vpop.permute.xlu1 %1393 }
0x1385   :  { %v1392_v32 = vpop.permute.xlu0 %1391 }
0x1386   :  { %2488 = vmatprep.mubr.msk.f32.mxu0 %vm359_vm1, %v1392_v32 }
0x1387   :  { %2489 = vmatmul.mubr.msk.f32.vlgmr.msra.gmra.mrb[10].mxu0 %vm359_vm1, %v1394_v44 }
0x1388   :  { %2618 = vmatpush3.bf16.msra.mxu0 %v2923_v11 }
0x1389   :  { %2620 = vmatprep.subr.bf16.mxu0 %v2939_v18 }
0x138c   :  { %2622 = vmatpush3.bf16.msra.mxu0 %v2939_v18 }
0x138d   :  { %2624 = vmatprep.subr.bf16.mxu0 %v2923_v11 }
0x145a   :  { %v2490_v34 = vpop.f32.mrb[10].mxu0 }
0x145b   :  { %v1475_v35 = vadd.f32 %v2490_v34, %v283_v50  ;;  %v1465_v36 = vpop.f32.mrb[11].mxu0 }
0x145c   :  { %v1474_v37 = vadd.f32 %v1465_v36, %v278_v33 }
0x145d   :  { %2803 = vtanh.f32 %v1475_v35  ;;  %v2226_v40 = vmul.f32 -1.442695, %v1475_v35 }
0x145e   :  { %2805 = vtanh.f32 %v1474_v37  ;;  %v2225_v41 = vmul.f32 -1.442695, %v1474_v37 }
0x145f   :  { %2807 = vpow2.f32 %v2226_v40 }
0x1460   :  { %2809 = vpow2.f32 %v2225_v41 }
0x1467   :  { %v2804_v38 = vpop.eup %2803 }
0x1468   :  { %v2806_v39 = vpop.eup %2805  ;;  %1496 = vrot.lane.b32.xlu1 %v2804_v38, %s2857_s18 }
0x1469   :  { %1494 = vrot.lane.b32.xlu0 %v2806_v39, %s2857_s18  ;;  %v2808_v53 = vpop.eup %2807 }
0x146a   :  { %v2810_v42 = vpop.eup %2809  ;;  %v1483_v56 = vadd.f32 1.0, %v2808_v53 }
0x146b   :  { %v1482_v54 = vadd.f32 1.0, %v2810_v42 }
0x146c   :  { %2811 = vrcp.f32 %v1483_v56 }
0x146d   :  { %2813 = vrcp.f32 %v1482_v54  ;;  %v313_v54 = vadd.f32 %v3072_v59, %v3079_v0 }
0x1476   :  { %v2812_v58 = vpop.eup %2811 }
0x1477   :  { %v2814_v62 = vpop.eup %2813  ;;  %v1491_v2 = vmul.f32 %v2812_v58, %v1363_v25 }
0x1478   :  { %v1490_v3 = vmul.f32 %v2814_v62, %v1362_v27 }
0x14da   :  { %v1497_v60 = vpop.permute.xlu1 %1496 }
0x14db   :  { %v1501_v63 = vmul.f32 %v2812_v58, %v1497_v60  ;;  %v1495_v47 = vpop.permute.xlu0 %1494 }
0x14dc   :  { %v1500_v1 = vmul.f32 %v2814_v62, %v1495_v47 }
0x14dd   :  { %1506 = vrot.lane.b32.xlu1 %v1501_v63, %s2858_s19 }
0x14de   :  { %1504 = vrot.lane.b32.xlu0 %v1500_v1, %s2858_s19 }
0x154f   :  { %v1507_v48 = vpop.permute.xlu1 %1506 }
0x1550   :  { %v1511_v4 = vadd.f32 %v1507_v48, %v1491_v2  ;;  %v1505_v5 = vpop.permute.xlu0 %1504 }
0x1551   :  { %v1510_v6 = vadd.f32 %v1505_v5, %v1490_v3 }
0x1552   :  { %2815 = vtanh.f32 %v1511_v4 }
0x1553   :  { %2817 = vtanh.f32 %v1510_v6 }
0x155c   :  { %v2816_v7 = vpop.eup %2815 }
0x155d   :  { %v2818_v8 = vpop.eup %2817  ;;  %1518 = vrot.lane.b32.xlu1 %v2816_v7, %s2857_s18 }
0x155e   :  { %1516 = vrot.lane.b32.xlu0 %v2818_v8, %s2857_s18 }
0x15cf   :  { %v1519_v9 = vpop.permute.xlu1 %1518 }
0x15d0   :  { %v1523_v10 = vmul.f32 %v2812_v58, %v1519_v9  ;;  %v1517_v12 = vpop.permute.xlu0 %1516  ;;  %v2855_v9 = vld [vmem:[%s3282_s3] ss:$0 sm:$0xff] }
0x15d1   :  { %v3209_v13 = vmul.f32 %v2814_v62, %v1517_v12 }
0x15d2   :  { %1541 = vrot.lane.b32.xlu1 %v1523_v10, %s2858_s19  ;;  %v323_v10 = vadd.f32 %v2855_v9, %v3074_v61  ;;  %v2243_v61 = vld [vmem:[%s3283_s4] ss:$0 sm:$0xff] }
0x15d3   :  { %1539 = vrot.lane.b32.xlu0 %v3209_v13, %s2858_s19 }
0x1644   :  { %v1542_v51 = vpop.permute.xlu1 %1541 }
0x1645   :  { %v1540_v14 = vpop.permute.xlu0 %1539 }
0x1646   :  { %2499 = vmatprep.mubr.msk.f32.mxu0 %vm359_vm1, %v1540_v14 }
0x1647   :  { %2500 = vmatmul.mubr.msk.f32.vlgmr.msra.gmra.mrb[12].mxu0 %vm359_vm1, %v1542_v51 }
0x1648   :  { %2626 = vmatpush3.bf16.msra.mxu0 %v2923_v11 }
0x1649   :  { %2628 = vmatprep.subr.bf16.mxu0 %v2939_v18 }
0x164c   :  { %2630 = vmatpush3.bf16.msra.mxu0 %v2939_v18 }
0x164d   :  { %2632 = vmatprep.subr.bf16.mxu0 %v2923_v11 }
0x171a   :  { %v2501_v16 = vpop.f32.mrb[12].mxu0 }
0x171b   :  { %v1623_v52 = vadd.f32 %v2501_v16, %v293_v15  ;;  %v1613_v45 = vpop.f32.mrb[13].mxu0 }
0x171d   :  { %2819 = vtanh.f32 %v1623_v52  ;;  %v2230_v19 = vmul.f32 -1.442695, %v1623_v52 }
0x171f   :  { %2821 = vpow2.f32 %v2230_v19 }
0x1727   :  { %v2820_v17 = vpop.eup %2819 }
0x1728   :  { %1644 = vrot.lane.b32.xlu0 %v2820_v17, %s2857_s18 }
0x1729   :  { %v2822_v46 = vpop.eup %2821 }
0x172a   :  { %v1631_v20 = vadd.f32 1.0, %v2822_v46 }
0x172c   :  { %2823 = vrcp.f32 %v1631_v20 }
0x1736   :  { %v2824_v21 = vpop.eup %2823 }
0x1737   :  { %v1639_v55 = vmul.f32 %v2824_v21, %v1511_v4 }
0x179a   :  { %v1645_v22 = vpop.permute.xlu0 %1644 }
0x179b   :  { %v1649_v23 = vmul.f32 %v2824_v21, %v1645_v22 }
0x179d   :  { %1654 = vrot.lane.b32.xlu1 %v1649_v23, %s2858_s19 }
0x17a1   :  { %1687 = vrot.lane.b32.xlu1 %v3209_v13, %s2858_s19 }
0x180f   :  { %v1655_v24 = vpop.permute.xlu1 %1654 }
0x1810   :  { %v1659_v25 = vadd.f32 %v1655_v24, %v1639_v55  ;;  %v2244_v55 = vld [vmem:[%s3283_s4 + $0x1] ss:$0 sm:$0xff]  ;;  %v11_v24 = vstv %s3284_s5 }
0x1811   :  { %12 = vst [vmem:[#allocation3] sm:$0x1] %v11_v24 }
0x1812   :  { %2825 = vtanh.f32 %v1659_v25 }
0x1813   :  { %v1688_v26 = vpop.permute.xlu1 %1687 }
0x1814   :  { %2510 = vmatprep.mubr.msk.f32.mxu0 %vm359_vm1, %v1688_v26 }
0x181c   :  { %v2826_v27 = vpop.eup %2825 }
0x181d   :  { %1666 = vrot.lane.b32.xlu0 %v2826_v27, %s2857_s18 }
0x188f   :  { %v1667_v28 = vpop.permute.xlu0 %1666 }
0x1890   :  { %v1671_v29 = vmul.f32 %v2824_v21, %v1667_v28 }
0x1892   :  { %1689 = vrot.lane.b32.xlu0 %v1671_v29, %s2858_s19 }
0x1904   :  { %v1690_v30 = vpop.permute.xlu0 %1689 }
0x1905   :  { %2511 = vmatmul.mubr.msk.f32.vlgmr.msra.gmra.mrb[14].mxu0 %vm359_vm1, %v1690_v30 }
0x1906   :  { %2634 = vmatpush3.bf16.msra.mxu0 %v2923_v11 }
0x1907   :  { %2636 = vmatprep.subr.bf16.mxu0 %v2939_v18 }
0x190a   :  { %2638 = vmatpush3.bf16.msra.mxu0 %v2939_v18 }
0x190b   :  { %2640 = vmatprep.subr.bf16.mxu0 %v2923_v11 }
0x19d8   :  { %v2512_v31 = vpop.f32.mrb[14].mxu0 }
0x19d9   :  { %v1771_v49 = vadd.f32 %v2512_v31, %v303_v43  ;;  %v1761_v32 = vpop.f32.mrb[15].mxu0 }
0x19da   :  { %v2245_v32 = vld [vmem:[#allocation3] ss:$0 sm:$0xff] }
0x19db   :  { %2827 = vtanh.f32 %v1771_v49  ;;  %v2234_v50 = vmul.f32 -1.442695, %v1771_v49 }
0x19dd   :  { %2829 = vpow2.f32 %v2234_v50 }
0x19e5   :  { %v2828_v44 = vpop.eup %2827 }
0x19e6   :  { %1792 = vrot.lane.b32.xlu1 %v2828_v44, %s2857_s18 }
0x19e7   :  { %v2830_v33 = vpop.eup %2829 }
0x19e8   :  { %v1779_v34 = vadd.f32 1.0, %v2830_v33 }
0x19ea   :  { %2831 = vrcp.f32 %v1779_v34 }
0x19f4   :  { %v2832_v35 = vpop.eup %2831 }
0x19f5   :  { %v1787_v57 = vmul.f32 %v2832_v35, %v1659_v25 }
0x1a58   :  { %v1793_v36 = vpop.permute.xlu1 %1792 }
0x1a59   :  { %v1797_v37 = vmul.f32 %v2832_v35, %v1793_v36 }
0x1a5b   :  { %1802 = vrot.lane.b32.xlu0 %v1797_v37, %s2858_s19 }
0x1a5f   :  { %1835 = vrot.lane.b32.xlu0 %v3209_v13, %s2858_s19 }
0x1acd   :  { %v1803_v38 = vpop.permute.xlu0 %1802 }
0x1ace   :  { %v1807_v39 = vadd.f32 %v1803_v38, %v1787_v57 }
0x1ad0   :  { %2833 = vtanh.f32 %v1807_v39 }
0x1ad1   :  { %v1836_v40 = vpop.permute.xlu0 %1835 }
0x1ad2   :  { %2521 = vmatprep.mubr.msk.f32.mxu0 %vm359_vm1, %v1836_v40 }
0x1ada   :  { %v2834_v41 = vpop.eup %2833 }
0x1adb   :  { %1814 = vrot.lane.b32.xlu1 %v2834_v41, %s2857_s18 }
0x1b4d   :  { %v1815_v53 = vpop.permute.xlu1 %1814 }
0x1b4e   :  { %v1819_v42 = vmul.f32 %v2832_v35, %v1815_v53 }
0x1b50   :  { %1837 = vrot.lane.b32.xlu1 %v1819_v42, %s2858_s19 }
0x1bc2   :  { %v1838_v56 = vpop.permute.xlu1 %1837 }
0x1bc3   :  { %2522 = vmatmul.mubr.msk.f32.vlgmr.msra.gmra.mrb[16].mxu0 %vm359_vm1, %v1838_v56 }
0x1bc4   :  { %2642 = vmatpush3.bf16.msra.mxu0 %v2923_v11 }
0x1bc5   :  { %2644 = vmatprep.subr.bf16.mxu0 %v2939_v18 }
0x1bc8   :  { %2646 = vmatpush3.bf16.msra.mxu0 %v2939_v18 }
0x1c96   :  { %v2523_v58 = vpop.f32.mrb[16].mxu0 }
0x1c97   :  { %v1919_v60 = vadd.f32 %v2523_v58, %v313_v54  ;;  %v1909_v62 = vpop.f32.mrb[17].mxu0 }
0x1c99   :  { %2835 = vtanh.f32 %v1919_v60  ;;  %v2238_v47 = vmul.f32 -1.442695, %v1919_v60 }
0x1c9b   :  { %2837 = vpow2.f32 %v2238_v47 }
0x1ca3   :  { %v2836_v63 = vpop.eup %2835 }
0x1ca4   :  { %1940 = vrot.lane.b32.xlu0 %v2836_v63, %s2857_s18 }
0x1ca5   :  { %v2838_v1 = vpop.eup %2837 }
0x1ca6   :  { %v1927_v2 = vadd.f32 1.0, %v2838_v1 }
0x1ca8   :  { %2839 = vrcp.f32 %v1927_v2 }
0x1cb2   :  { %v2840_v11 = vpop.eup %2839 }
0x1cb3   :  { %v1935_v18 = vmul.f32 %v2840_v11, %v1807_v39 }
0x1d16   :  { %v1941_v48 = vpop.permute.xlu0 %1940 }
0x1d17   :  { %v1945_v3 = vmul.f32 %v2840_v11, %v1941_v48 }
0x1d19   :  { %1950 = vrot.lane.b32.xlu1 %v1945_v3, %s2858_s19 }
0x1d1d   :  { %1983 = vrot.lane.b32.xlu1 %v3209_v13, %s2858_s19 }
0x1d8b   :  { %v1951_v59 = vpop.permute.xlu1 %1950 }
0x1d8c   :  { %v1955_v0 = vadd.f32 %v1951_v59, %v1935_v18 }
0x1d8e   :  { %2841 = vtanh.f32 %v1955_v0 }
0x1d8f   :  { %v1984_v4 = vpop.permute.xlu1 %1983 }
0x1d90   :  { %2532 = vmatprep.mubr.msk.f32.mxu0 %vm359_vm1, %v1984_v4 }
0x1d98   :  { %v2842_v5 = vpop.eup %2841 }
0x1d99   :  { %1962 = vrot.lane.b32.xlu0 %v2842_v5, %s2857_s18 }
0x1e0b   :  { %v1963_v6 = vpop.permute.xlu0 %1962 }
0x1e0c   :  { %v1967_v7 = vmul.f32 %v2840_v11, %v1963_v6 }
0x1e0e   :  { %1985 = vrot.lane.b32.xlu0 %v1967_v7, %s2858_s19 }
0x1e80   :  { %v1986_v8 = vpop.permute.xlu0 %1985 }
0x1e81   :  { %2533 = vmatmul.mubr.msk.f32.vlgmr.msra.gmra.mrb[18].mxu0 %vm359_vm1, %v1986_v8 }
0x1f54   :  { %v2534_v12 = vpop.f32.mrb[18].mxu0 }
0x1f55   :  { %v2067_v14 = vadd.f32 %v2534_v12, %v323_v10  ;;  %v2057_v51 = vpop.f32.mrb[19].mxu0 }
0x1f57   :  { %2843 = vtanh.f32 %v2067_v14  ;;  %v2242_v16 = vmul.f32 -1.442695, %v2067_v14 }
0x1f59   :  { %2845 = vpow2.f32 %v2242_v16 }
0x1f61   :  { %v2844_v15 = vpop.eup %2843 }
0x1f62   :  { %2088 = vrot.lane.b32.xlu1 %v2844_v15, %s2857_s18 }
0x1f63   :  { %v2846_v52 = vpop.eup %2845 }
0x1f64   :  { %v2075_v45 = vadd.f32 1.0, %v2846_v52 }
0x1f66   :  { %2847 = vrcp.f32 %v2075_v45 }
0x1f70   :  { %v2848_v17 = vpop.eup %2847 }
0x1f71   :  { %v2083_v20 = vmul.f32 %v2848_v17, %v1955_v0 }
0x1fd4   :  { %v2089_v19 = vpop.permute.xlu1 %2088 }
0x1fd5   :  { %v2093_v46 = vmul.f32 %v2848_v17, %v2089_v19 }
0x1fd7   :  { %2098 = vrot.lane.b32.xlu0 %v2093_v46, %s2858_s19 }
0x1fdb   :  { %2130 = vrot.lane.b32.xlu0 %v2243_v61, %s2859_s1 }
0x2049   :  { %v2099_v21 = vpop.permute.xlu0 %2098 }
0x204a   :  { %v2103_v22 = vadd.f32 %v2099_v21, %v2083_v20 }
0x204c   :  { %2849 = vtanh.f32 %v2103_v22 }
0x204d   :  { %v2131_v26 = vpop.permute.xlu0 %2130 }
0x204e   :  { %v2133_v29 = vmul.f32 %v2131_v26, %v3209_v13 }
0x2056   :  { %v2850_v23 = vpop.eup %2849 }
0x2057   :  { %2110 = vrot.lane.b32.xlu1 %v2850_v23, %s2857_s18 }
0x205b   :  { %2140 = vrot.lane.b32.xlu1 %v2244_v55, %s2859_s1 }
0x20c9   :  { %v2111_v25 = vpop.permute.xlu1 %2110 }
0x20ca   :  { %v2115_v27 = vmul.f32 %v2848_v17, %v2111_v25 }
0x20cd   :  { %v2141_v28 = vpop.permute.xlu1 %2140 }
0x20ce   :  { %v2143_v30 = vmul.f32 %v2141_v28, %v2115_v27 }
0x20d0   :  { %v2144_v43 = vadd.f32 %v2143_v30, %v2133_v29 }
0x20d2   :  { %2146 = vrot.lane.b32.xlu0 %v2144_v43, %s2858_s19 }
0x2144   :  { %v2147_v31 = vpop.permute.xlu0 %2146 }
0x2145   :  { %v2149_v49 = vsel %vm359_vm1, %v2147_v31, 0.0 }
0x2146   :  { %2150 = vadd.xlane.f32.xlu1 %v2149_v49 }
0x21d3   :  { %v2151_v44 = vpop.xlane.xlu1 %2150 }
0x21d4   :  { %v2159_v50 = vadd.f32 %v2245_v32, %v2151_v44 }
0x21d6   :  { %v2246_v33 = vmul.f32 -1.442695, %v2159_v50 }
0x21d8   :  { %2851 = vpow2.f32 %v2246_v33 }
0x21e2   :  { %v2852_v34 = vpop.eup %2851 }
0x21e3   :  { %v2163_v35 = vadd.f32 1.0, %v2852_v34 }
0x21e5   :  { %2853 = vrcp.f32 %v2163_v35 }
0x21ef   :  { %v2854_v36 = vpop.eup %2853 }
0x21f0   :  { %2167 = vst.msk [vmem:[%s3285_s6] sm:$0xff] %vm2166_vm2, %v2854_v36 }

</bundles_post_ra>
